<compile_context>
chip_gen: v6e
topology: v6e:2x2x1
jax: 0.10.0
libtpu: 0.0.40
codegen_flags: <defaults>
</compile_context>

<pallas_src>
import functools

import jax
import jax.numpy as jnp
from jax import lax
from jax.experimental import pallas as pl
from jax.experimental.pallas import tpu as pltpu


# ----------------------------- configuration --------------------------------
EMBED_SIZE = 8               # embedding_size
OBS_SHAPE = (4, 4)           # obs_shape
LAYERS = (32,)               # hidden layers
NUM_ACTIONS = 6              # num_actions
BATCH = 2
VOCAB = 256
assert VOCAB & (VOCAB - 1) == 0  # power of two (lane % VOCAB lowers to AND)

P = 1
for _d in OBS_SHAPE:
    P *= _d                  # flattened obs positions per sample
OBS_SIZE = P * EMBED_SIZE    # MLP input width (= 128 here)
HIDDEN = LAYERS[0]
HPAD = 128                   # lane-padded fused actor+critic hidden width
OUT_W = 128                  # lane-dense packed output width
assert 2 * NUM_ACTIONS + 1 <= OUT_W
assert 2 * HIDDEN <= HPAD

MAX_BATCH_TILE = 256         # fills v6e/v7x 256-row MXU; fine on v5e too


# ------------------------------- kernel --------------------------------------
def _ptb_kernel(idx_ref, ind_ref, bd_ref, w1_ref, w2_ref, bias_ref, out_ref, *,
                vocab, num_actions):
    bt, positions = idx_ref.shape
    kw = positions * vocab            # one-hot width over (position, vocab)
    out_w = out_ref.shape[1]

    # ---- one-hot in (bt, P*VOCAB) lane layout: one matmul + one compare ------
    ids = idx_ref[...]                                            # (bt, P) i32
    ids_bf = ids.astype(jnp.bfloat16)                             # 0..255 exact
    # broadcast ids[b, p] across its 256-lane vocab block via the MXU
    bcast = jnp.dot(ids_bf, ind_ref[...],
                    preferred_element_type=jnp.float32)           # (bt, kw) f32
    lane = lax.broadcasted_iota(jnp.int32, (bt, kw), 1)
    lane_v = (lane & (vocab - 1)).astype(jnp.float32)             # lane % vocab
    oh = (bcast == lane_v).astype(jnp.bfloat16)                   # one-hot, bf16

    # ---- embedding lookup directly in (bt, P*E) layout -----------------------
    # block-diagonal table => feat[b, p*E + e] = emb_table[idx[b, p], e]
    feat = jnp.dot(oh, bd_ref[...], preferred_element_type=jnp.float32)

    # ---- fused actor/critic layer 1 (lane-dense 128-wide hidden) -------------
    bias = bias_ref[...]                                          # (2, 128) f32
    h = jnp.dot(feat.astype(jnp.bfloat16), w1_ref[...],
                preferred_element_type=jnp.float32) + bias[0:1, :]
    h = jnp.maximum(h, 0.0)                                       # f32 ReLU

    # ---- fused layer 2 -> packed lane-dense (bt, 128) -------------------------
    # columns: [0:NA]   actor logits
    #          [NA:2NA] actor logits again (turned into log-probs below)
    #          [2NA]    critic value
    z = jnp.dot(h.astype(jnp.bfloat16), w2_ref[...],
                preferred_element_type=jnp.float32) + bias[1:2, :]

    lane_o = lax.broadcasted_iota(jnp.int32, (bt, out_w), 1)
    is_logit = lane_o < num_actions
    z_m = jnp.where(is_logit, z, -1e30)       # mask BEFORE exp (no inf lanes)
    m = jnp.max(z_m, axis=-1, keepdims=True)
    p_exp = jnp.exp(z_m - m)
    lse = m + jnp.log(jnp.sum(p_exp, axis=-1, keepdims=True))
    is_logp = (lane_o >= num_actions) & (lane_o < 2 * num_actions)
    out_ref[...] = z - jnp.where(is_logp, lse, 0.0)               # one full store


# --------------------------- parameter packing --------------------------------
def pack_params(params):
    """Repack module params into fused, MXU-friendly bf16 operands (done once)."""
    emb, aw1, ab1, aw2, ab2, cw1, cb1, cw2, cb2 = params
    f32, bf16 = jnp.float32, jnp.bfloat16

    # id-broadcast indicator: ind[p, p*VOCAB + v] = 1
    ind = jnp.kron(jnp.eye(P, dtype=f32), jnp.ones((1, VOCAB), f32)).astype(bf16)

    # block-diagonal embedding table: (P*VOCAB, P*E)
    # TODO(synk): for the tiny-batch latency path this 1 MiB table could be
    # built once in a VMEM scratch from the raw (256, E) table to shrink the
    # weight DMA ~16x; irrelevant for large batches where it amortizes.
    bd = jnp.kron(jnp.eye(P, dtype=f32), emb.astype(f32)).astype(bf16)

    # fused, lane-padded first layer [actor | critic | zeros]: (128, 128)
    w1f = jnp.zeros((OBS_SIZE, HPAD), f32)
    w1f = w1f.at[:, 0:HIDDEN].set(aw1.astype(f32))
    w1f = w1f.at[:, HIDDEN:2 * HIDDEN].set(cw1.astype(f32))
    w1f = w1f.astype(bf16)

    # fused, lane-padded second layer: (128, 128)
    w2f = jnp.zeros((HPAD, OUT_W), f32)
    w2f = w2f.at[0:HIDDEN, 0:NUM_ACTIONS].set(aw2.astype(f32))
    w2f = w2f.at[0:HIDDEN, NUM_ACTIONS:2 * NUM_ACTIONS].set(aw2.astype(f32))
    w2f = w2f.at[HIDDEN:2 * HIDDEN, 2 * NUM_ACTIONS].set(cw2.astype(f32)[:, 0])
    w2f = w2f.astype(bf16)

    # all biases packed into one (2, 128) f32 operand
    bias = jnp.zeros((2, OUT_W), f32)
    bias = bias.at[0, 0:HIDDEN].set(ab1[0].astype(f32))
    bias = bias.at[0, HIDDEN:2 * HIDDEN].set(cb1[0].astype(f32))
    b2 = jnp.zeros((OUT_W,), f32)
    b2 = b2.at[0:NUM_ACTIONS].set(ab2[0].astype(f32))
    b2 = b2.at[NUM_ACTIONS:2 * NUM_ACTIONS].set(ab2[0].astype(f32))
    b2 = b2.at[2 * NUM_ACTIONS].set(cb2[0, 0].astype(f32))
    bias = bias.at[1].set(b2)
    return ind, bd, w1f, w2f, bias


# ------------------------------ wrapper ---------------------------------------
def _round_up(x, m):
    return ((x + m - 1) // m) * m


def _choose_batch_tile(b):
    """Batch tile + padded batch: tiny batches single-step; otherwise >= 2
    roughly balanced grid steps (v7x megacore) with tile capped at 256 rows
    (v6e/v7x 256-row MXU)."""
    padded = _round_up(b, 8)
    if padded <= 8:
        return padded, padded
    bt = min(_round_up((padded + 1) // 2, 8), MAX_BATCH_TILE)
    padded = _round_up(padded, bt)
    return bt, padded


def ptb_actor_critic_forward(x, packed):
    """x: int array (B, *obs_shape). Returns (logits, log_probs, values)."""
    ind, bd, w1f, w2f, bias = packed
    b = x.shape[0]
    idx = x.reshape(b, P).astype(jnp.int32)

    bt, padded = _choose_batch_tile(b)
    if padded != b:
        idx = jnp.pad(idx, ((0, padded - b), (0, 0)))

    kernel = functools.partial(_ptb_kernel, vocab=VOCAB, num_actions=NUM_ACTIONS)

    packed_out = pl.pallas_call(
        kernel,
        out_shape=jax.ShapeDtypeStruct((padded, OUT_W), jnp.float32),
        grid=(padded // bt,),
        in_specs=[
            pl.BlockSpec((bt, P), lambda i: (i, 0)),       # indices: batch-tiled
            pl.BlockSpec(ind.shape, lambda i: (0, 0)),     # weights: resident
            pl.BlockSpec(bd.shape, lambda i: (0, 0)),
            pl.BlockSpec(w1f.shape, lambda i: (0, 0)),
            pl.BlockSpec(w2f.shape, lambda i: (0, 0)),
            pl.BlockSpec(bias.shape, lambda i: (0, 0)),
        ],
        out_specs=pl.BlockSpec((bt, OUT_W), lambda i: (i, 0)),
        compiler_params=pltpu.CompilerParams(
            dimension_semantics=("parallel",),             # v7x: 2 TCs share batch
            vmem_limit_bytes=32 * 1024 * 1024),
    )(idx, ind, bd, w1f, w2f, bias)

    packed_out = packed_out[:b]
    logits = packed_out[:, 0:NUM_ACTIONS]
    logp = packed_out[:, NUM_ACTIONS:2 * NUM_ACTIONS]
    values = packed_out[:, 2 * NUM_ACTIONS:2 * NUM_ACTIONS + 1]
    return logits, logp, values


# -------------------------- deterministic params ------------------------------
def init_params(key):
    ks = jax.random.split(key, 9)
    s = 0.1
    f32, bf16 = jnp.float32, jnp.bfloat16
    emb = (s * jax.random.normal(ks[0], (VOCAB, EMBED_SIZE), f32)).astype(bf16)
    h = HIDDEN
    # weights stored (in, out) == transposed nn.Linear.weight, bf16; biases f32
    aw1 = (s * jax.random.normal(ks[1], (OBS_SIZE, h), f32)).astype(bf16)
    ab1 = s * jax.random.normal(ks[2], (1, h), f32)
    aw2 = (s * jax.random.normal(ks[3], (h, NUM_ACTIONS), f32)).astype(bf16)
    ab2 = s * jax.random.normal(ks[4], (1, NUM_ACTIONS), f32)
    cw1 = (s * jax.random.normal(ks[5], (OBS_SIZE, h), f32)).astype(bf16)
    cb1 = s * jax.random.normal(ks[6], (1, h), f32)
    cw2 = (s * jax.random.normal(ks[7], (h, 1), f32)).astype(bf16)
    cb2 = s * jax.random.normal(ks[8], (1, 1), f32)
    return emb, aw1, ab1, aw2, ab2, cw1, cb1, cw2, cb2


# ------------------------- pure-JAX reference check ----------------------------
def reference_forward(x, params):
    # NOTE: this reference deliberately mirrors the kernel's mixed precision
    # (bf16 matmul operands, f32 accumulation, bf16-rounded hidden
    # activations).  A true f32 PyTorch PTBActorCritic would differ by ~1e-2
    # scale due to bf16 weights/activations, which is expected and not what
    # this parity check validates.
    emb, aw1, ab1, aw2, ab2, cw1, cb1, cw2, cb2 = [
        p.astype(jnp.float32) for p in params]
    b = x.shape[0]
    feat = jnp.take(emb, x.reshape(b, -1).astype(jnp.int32), axis=0).reshape(b, -1)
    rnd = lambda a: a.astype(jnp.bfloat16).astype(jnp.float32)
    ha = rnd(jnp.maximum(feat @ aw1 + ab1, 0.0))
    logits = ha @ aw2 + ab2
    logp = jax.nn.log_softmax(logits, axis=-1)
    hc = rnd(jnp.maximum(feat @ cw1 + cb1, 0.0))
    vals = hc @ cw2 + cb2
    return logits, logp, vals


if __name__ == "__main__":
    key = jax.random.PRNGKey(0)
    k_params, k_x1, k_x2 = jax.random.split(key, 3)

    params = init_params(k_params)
    packed = pack_params(params)           # one-time weight repacking

    def check(xb):
        logits, logp, values = ptb_actor_critic_forward(xb, packed)
        jax.block_until_ready((logits, logp, values))
        rl, rp, rv = reference_forward(xb, params)
        assert jnp.allclose(logits, rl, atol=2e-3), "actor logits mismatch"
        assert jnp.allclose(logp, rp, atol=2e-3), "log-probs mismatch"
        assert jnp.allclose(values, rv, atol=2e-3), "values mismatch"

    # small batch (spec-sized): single-step latency path
    x_small = jax.random.randint(k_x1, (BATCH,) + OBS_SHAPE, 0, VOCAB,
                                 dtype=jnp.int32)
    check(x_small)

    # larger batch exercises the balanced 2-step "parallel" grid (2 x 104 rows
    # after padding), which shards across v7x's two TensorCores.
    x_big = jax.random.randint(k_x2, (200,) + OBS_SHAPE, 0, VOCAB,
                               dtype=jnp.int32)
    check(x_big)

    # TODO(synk): Categorical.sample() (get_actions) needs RNG draws; the
    # distribution is represented here by its normalized log-probs.
    print("KERNEL_OK")
</pallas_src>

<mosaic_0001>
module attributes {stable_mosaic.version = 11 : i64} {
  func.func @_ptb_kernel(%arg0: i32, %arg1: memref<8x16xi32, #tpu.memory_space<vmem>>, %arg2: memref<16x4096xbf16, #tpu.memory_space<vmem>>, %arg3: memref<4096x128xbf16, #tpu.memory_space<vmem>>, %arg4: memref<128x128xbf16, #tpu.memory_space<vmem>>, %arg5: memref<128x128xbf16, #tpu.memory_space<vmem>>, %arg6: memref<2x128xf32, #tpu.memory_space<vmem>>, %arg7: memref<8x128xf32, #tpu.memory_space<vmem>>) attributes {dimension_semantics = [#tpu.dimension_semantics<parallel>], iteration_bounds = array<i64: 1>, scalar_prefetch = 0 : i64, scratch_operands = 0 : i64, tpu.core_type = #tpu.core_type<tc>, window_params = [{transform_indices = @transform_0, window_bounds = array<i64: 8, 16>}, {pipeline_mode = #tpu.pipeline_mode<synchronous>, transform_indices = @transform_1, window_bounds = array<i64: 16, 4096>}, {pipeline_mode = #tpu.pipeline_mode<synchronous>, transform_indices = @transform_2, window_bounds = array<i64: 4096, 128>}, {pipeline_mode = #tpu.pipeline_mode<synchronous>, transform_indices = @transform_3, window_bounds = array<i64: 128, 128>}, {pipeline_mode = #tpu.pipeline_mode<synchronous>, transform_indices = @transform_4, window_bounds = array<i64: 128, 128>}, {pipeline_mode = #tpu.pipeline_mode<synchronous>, transform_indices = @transform_5, window_bounds = array<i64: 2, 128>}, {transform_indices = @transform_6, window_bounds = array<i64: 8, 128>}]} {
    %c0 = arith.constant 0 : index
    %c0_0 = arith.constant 0 : index
    %0 = vector.load %arg1[%c0, %c0_0] : memref<8x16xi32, #tpu.memory_space<vmem>>, vector<8x16xi32>
    %1 = arith.sitofp %0 : vector<8x16xi32> to vector<8x16xbf16>
    %c0_1 = arith.constant 0 : index
    %c0_2 = arith.constant 0 : index
    %2 = vector.load %arg2[%c0_1, %c0_2] : memref<16x4096xbf16, #tpu.memory_space<vmem>>, vector<16x4096xbf16>
    %cst = arith.constant dense<0.000000e+00> : vector<8x4096xf32>
    %3 = tpu.matmul %1, %2, %cst {dimension_numbers = #tpu.dot_dimension_numbers<[1], [0], [0], [1], [0, 0, 1, 1], [], []>} : vector<8x16xbf16>, vector<16x4096xbf16>, vector<8x4096xf32> -> vector<8x4096xf32>
    %4 = tpu.iota {dimensions = array<i32: 1>} : vector<8x4096xi32>
    %c255_i32 = arith.constant 255 : i32
    %5 = vector.broadcast %c255_i32 : i32 to vector<8x4096xi32>
    %6 = arith.andi %4, %5 : vector<8x4096xi32>
    %7 = arith.sitofp %6 : vector<8x4096xi32> to vector<8x4096xf32>
    %8 = arith.cmpf oeq, %3, %7 : vector<8x4096xf32>
    %9 = arith.extui %8 : vector<8x4096xi1> to vector<8x4096xi32>
    %10 = arith.sitofp %9 : vector<8x4096xi32> to vector<8x4096xf32>
    %11 = arith.truncf %10 : vector<8x4096xf32> to vector<8x4096xbf16>
    %c0_3 = arith.constant 0 : index
    %c0_4 = arith.constant 0 : index
    %12 = vector.load %arg3[%c0_3, %c0_4] : memref<4096x128xbf16, #tpu.memory_space<vmem>>, vector<4096x128xbf16>
    %cst_5 = arith.constant dense<0.000000e+00> : vector<8x128xf32>
    %13 = tpu.matmul %11, %12, %cst_5 {dimension_numbers = #tpu.dot_dimension_numbers<[1], [0], [0], [1], [0, 0, 1, 1], [], []>} : vector<8x4096xbf16>, vector<4096x128xbf16>, vector<8x128xf32> -> vector<8x128xf32>
    %c0_6 = arith.constant 0 : index
    %c0_7 = arith.constant 0 : index
    %14 = vector.load %arg6[%c0_6, %c0_7] : memref<2x128xf32, #tpu.memory_space<vmem>>, vector<2x128xf32>
    %15 = arith.truncf %13 : vector<8x128xf32> to vector<8x128xbf16>
    %c0_8 = arith.constant 0 : index
    %c0_9 = arith.constant 0 : index
    %16 = vector.load %arg4[%c0_8, %c0_9] : memref<128x128xbf16, #tpu.memory_space<vmem>>, vector<128x128xbf16>
    %cst_10 = arith.constant dense<0.000000e+00> : vector<8x128xf32>
    %17 = tpu.matmul %15, %16, %cst_10 {dimension_numbers = #tpu.dot_dimension_numbers<[1], [0], [0], [1], [0, 0, 1, 1], [], []>} : vector<8x128xbf16>, vector<128x128xbf16>, vector<8x128xf32> -> vector<8x128xf32>
    %18 = vector.extract_strided_slice %14 {offsets = [0, 0], sizes = [1, 128], strides = [1, 1]} : vector<2x128xf32> to vector<1x128xf32>
    %19 = vector.broadcast %18 : vector<1x128xf32> to vector<8x128xf32>
    %20 = arith.addf %17, %19 : vector<8x128xf32>
    %cst_11 = arith.constant 0.000000e+00 : f32
    %21 = vector.broadcast %cst_11 : f32 to vector<8x128xf32>
    %22 = arith.maximumf %20, %21 : vector<8x128xf32>
    %23 = arith.truncf %22 : vector<8x128xf32> to vector<8x128xbf16>
    %c0_12 = arith.constant 0 : index
    %c0_13 = arith.constant 0 : index
    %24 = vector.load %arg5[%c0_12, %c0_13] : memref<128x128xbf16, #tpu.memory_space<vmem>>, vector<128x128xbf16>
    %cst_14 = arith.constant dense<0.000000e+00> : vector<8x128xf32>
    %25 = tpu.matmul %23, %24, %cst_14 {dimension_numbers = #tpu.dot_dimension_numbers<[1], [0], [0], [1], [0, 0, 1, 1], [], []>} : vector<8x128xbf16>, vector<128x128xbf16>, vector<8x128xf32> -> vector<8x128xf32>
    %26 = vector.extract_strided_slice %14 {offsets = [1, 0], sizes = [1, 128], strides = [1, 1]} : vector<2x128xf32> to vector<1x128xf32>
    %27 = vector.broadcast %26 : vector<1x128xf32> to vector<8x128xf32>
    %28 = arith.addf %25, %27 : vector<8x128xf32>
    %29 = tpu.iota {dimensions = array<i32: 1>} : vector<8x128xi32>
    %c6_i32 = arith.constant 6 : i32
    %30 = vector.broadcast %c6_i32 : i32 to vector<8x128xi32>
    %31 = arith.cmpi slt, %29, %30 : vector<8x128xi32>
    %cst_15 = arith.constant -1.000000e+30 : f32
    %32 = vector.broadcast %cst_15 : f32 to vector<8x128xf32>
    %33 = arith.select %31, %28, %32 : vector<8x128xi1>, vector<8x128xf32>
    %cst_16 = arith.constant dense<0xFF800000> : vector<8xf32>
    %34 = vector.multi_reduction <maximumf>, %33, %cst_16 [1] : vector<8x128xf32> to vector<8xf32>
    %35 = vector.shape_cast %34 : vector<8xf32> to vector<8x1xf32>
    %36 = vector.broadcast %35 : vector<8x1xf32> to vector<8x128xf32>
    %37 = arith.subf %33, %36 : vector<8x128xf32>
    %38 = math.exp %37 : vector<8x128xf32>
    %cst_17 = arith.constant dense<0.000000e+00> : vector<8xf32>
    %39 = vector.multi_reduction <add>, %38, %cst_17 [1] : vector<8x128xf32> to vector<8xf32>
    %40 = vector.shape_cast %39 : vector<8xf32> to vector<8x1xf32>
    %41 = math.log %40 : vector<8x1xf32>
    %42 = arith.addf %35, %41 : vector<8x1xf32>
    %c6_i32_18 = arith.constant 6 : i32
    %43 = vector.broadcast %c6_i32_18 : i32 to vector<8x128xi32>
    %44 = arith.cmpi sge, %29, %43 : vector<8x128xi32>
    %c12_i32 = arith.constant 12 : i32
    %45 = vector.broadcast %c12_i32 : i32 to vector<8x128xi32>
    %46 = arith.cmpi slt, %29, %45 : vector<8x128xi32>
    %47 = arith.andi %44, %46 : vector<8x128xi1>
    %cst_19 = arith.constant 0.000000e+00 : f32
    %48 = vector.shape_cast %42 : vector<8x1xf32> to vector<8x1xf32>
    %49 = vector.broadcast %48 : vector<8x1xf32> to vector<8x128xf32>
    %50 = vector.broadcast %cst_19 : f32 to vector<8x128xf32>
    %51 = arith.select %47, %49, %50 : vector<8x128xi1>, vector<8x128xf32>
    %52 = arith.subf %28, %51 : vector<8x128xf32>
    %c0_20 = arith.constant 0 : index
    %c0_21 = arith.constant 0 : index
    %53 = vector.load %arg7[%c0_20, %c0_21] : memref<8x128xf32, #tpu.memory_space<vmem>>, vector<8x128xf32>
    tpu.vector_store %arg7[%c0_20, %c0_21], %52 {strides = array<i32>} : memref<8x128xf32, #tpu.memory_space<vmem>>, vector<8x128xf32>,
    return
  }
  func.func @transform_0(%arg0: i32) -> (i32, i32) {
    %c0_i32 = arith.constant 0 : i32
    %c0_i32_0 = arith.constant 0 : i32
    return %arg0, %c0_i32 : i32, i32
  }
  func.func @transform_1(%arg0: i32) -> (i32, i32) {
    %c0_i32 = arith.constant 0 : i32
    %c0_i32_0 = arith.constant 0 : i32
    %c0_i32_1 = arith.constant 0 : i32
    return %c0_i32, %c0_i32_0 : i32, i32
  }
  func.func @transform_2(%arg0: i32) -> (i32, i32) {
    %c0_i32 = arith.constant 0 : i32
    %c0_i32_0 = arith.constant 0 : i32
    %c0_i32_1 = arith.constant 0 : i32
    return %c0_i32, %c0_i32_0 : i32, i32
  }
  func.func @transform_3(%arg0: i32) -> (i32, i32) {
    %c0_i32 = arith.constant 0 : i32
    %c0_i32_0 = arith.constant 0 : i32
    %c0_i32_1 = arith.constant 0 : i32
    return %c0_i32, %c0_i32_0 : i32, i32
  }
  func.func @transform_4(%arg0: i32) -> (i32, i32) {
    %c0_i32 = arith.constant 0 : i32
    %c0_i32_0 = arith.constant 0 : i32
    %c0_i32_1 = arith.constant 0 : i32
    return %c0_i32, %c0_i32_0 : i32, i32
  }
  func.func @transform_5(%arg0: i32) -> (i32, i32) {
    %c0_i32 = arith.constant 0 : i32
    %c0_i32_0 = arith.constant 0 : i32
    %c0_i32_1 = arith.constant 0 : i32
    return %c0_i32, %c0_i32_0 : i32, i32
  }
  func.func @transform_6(%arg0: i32) -> (i32, i32) {
    %c0_i32 = arith.constant 0 : i32
    %c0_i32_0 = arith.constant 0 : i32
    return %arg0, %c0_i32 : i32, i32
  }
}

</mosaic_0001>

<bundles_post_ra>
// kernel: tpu_custom_call.1
= control target key start
LH: loop header
LB: loop body
LE: loop exit
PB: predicated region body
PF: predicated region fallthrough
CT: control target
= control target key end

     0   :  { %11 = vsyncpa [#allocation3], 0  ;;  %s5669_s0 = inlined_call_operand.hbm [shape: s32[8,16], index: 0, kind: input, shape index: {}]   ;;  %s5670_s1 = inlined_call_operand.hbm [shape: bf16[16,4096], index: 1, kind: input, shape index: {}]   ;;  %s5671_s2 = inlined_call_operand.hbm [shape: bf16[4096,128], index: 2, kind: input, shape index: {}]   ;;  %s5672_s3 = inlined_call_operand.hbm [shape: bf16[128,128], index: 3, kind: input, shape index: {}]   ;;  %s5673_s4 = inlined_call_operand.hbm [shape: bf16[128,128], index: 4, kind: input, shape index: {}]   ;;  %s5674_s5 = inlined_call_operand.vmem [shape: f32[2,128], index: 5, kind: input, shape index: {}]   ;;  %s5675_s6 = inlined_call_operand.hbm [shape: f32[8,128], index: 6, kind: output, shape index: {}]  }
   0x1   :  { %12 = vsyncpa [#allocation6], 0 }
   0x2   :  { %13 = vsyncpa [#allocation9], 0 }
   0x3   :  { %14 = vsyncpa [#allocation4], 0  ;;  %s5358_s21 = smov [#allocation5]  }
   0x4   :  { %s30_s22 = sshll.u32 %s5358_s21, 4  ;;  %s31_s22 = int_to_ptr.vmem [resolvable:$true] %s30_s22 }
   0x5   :  { %s5238_s23 = scalar_lea.vmem %s31_s22, 4096  ;;  %p5243_p1 = scmp.lt.s32.totalorder %s31_s22, %s31_s22 }
   0x6   :  { %p5239_p0 = scmp.ne.s32.totalorder %s31_s22, %s5238_s23  ;;  %p5244_p2 = scmp.lt.s32.totalorder %s5238_s23, %s5238_s23 }
   0x8   :  { %p5245_p3 = por %p5244_p2, %p5243_p1 }
   0xa   :  { %p5246_p4 = pnand %p5245_p3, %p5239_p0 }
   0xc   :  { %5249 = shalt.err (!%p5246_p4)
}
   0xd   :  { %s5359_s24 = smov 2048   ;;  %s5360_s25 = smov 128  }
   0xe   :  { %36 = dma.hbm_to_vmem [thread:$0]  %s5670_s1, 4096, %s31_s22, [#allocation6], %s5359_s24, %s5359_s24, %s5360_s25  }
   0xf   :  { %s5361_s28 = smov [#allocation8]   ;;  %s5362_s30 = smov [#allocation2]  }
  0x10   :  { %s54_s29 = sshll.u32 %s5361_s28, 4  ;;  %s21_s7 = sshll.u32 %s5362_s30, 4  ;;  %s55_s29 = int_to_ptr.vmem [resolvable:$true] %s54_s29  ;;  %s22_s7 = int_to_ptr.vmem [resolvable:$true] %s21_s7 }
  0x11   :  { %s5258_s8 = scalar_lea.vmem %s55_s29, 1024  ;;  %p5263_p6 = scmp.lt.s32.totalorder %s55_s29, %s55_s29 }
  0x12   :  { %p5259_p5 = scmp.ne.s32.totalorder %s55_s29, %s5258_s8  ;;  %p5264_p7 = scmp.lt.s32.totalorder %s5258_s8, %s5258_s8 }
  0x14   :  { %p5265_p8 = por %p5264_p7, %p5263_p6 }
  0x16   :  { %p5266_p9 = pnand %p5265_p8, %p5259_p5 }
  0x18   :  { %5269 = shalt.err (!%p5266_p9)
}
  0x19   :  { %s5363_s9 = smov 64   ;;  %s5364_s10 = smov 4  }
  0x1a   :  { %60 = dma.hbm_to_vmem [thread:$0]  %s5672_s3, 1024, %s55_s29, [#allocation9], %s5363_s9, %s5363_s9, %s5364_s10  }
  0x1b   :  { %s5278_s1 = scalar_lea.vmem %s22_s7, 128  ;;  %p5283_p11 = scmp.lt.s32.totalorder %s22_s7, %s22_s7 }
  0x1c   :  { %p5279_p10 = scmp.ne.s32.totalorder %s22_s7, %s5278_s1  ;;  %p5284_p12 = scmp.lt.s32.totalorder %s5278_s1, %s5278_s1 }
  0x1e   :  { %p5285_p13 = por %p5284_p12, %p5283_p11 }
  0x20   :  { %p5286_p0 = pnand %p5285_p13, %p5279_p10 }
  0x22   :  { %5289 = shalt.err (!%p5286_p0)
}
  0x23   :  { %24 = dma.hbm_to_vmem [thread:$0]  %s5669_s0, 128, %s22_s7, [#allocation3]  }
  0x24   :  { %s5365_s15 = smov [#allocation7]   ;;  %s5366_s17 = smov [#allocation10]  }
  0x25   :  { %s42_s16 = sshll.u32 %s5365_s15, 4  ;;  %s66_s18 = sshll.u32 %s5366_s17, 4  ;;  %s43_s16 = int_to_ptr.vmem [resolvable:$true] %s42_s16  ;;  %s67_s18 = int_to_ptr.vmem [resolvable:$true] %s66_s18 }
  0x26   :  { %s5298_s19 = scalar_lea.vmem %s43_s16, 32768  ;;  %p5303_p2 = scmp.lt.s32.totalorder %s43_s16, %s43_s16 }
  0x27   :  { %p5299_p1 = scmp.ne.s32.totalorder %s43_s16, %s5298_s19  ;;  %p5304_p3 = scmp.lt.s32.totalorder %s5298_s19, %s5298_s19 }
  0x29   :  { %p5305_p4 = por %p5304_p3, %p5303_p2 }
  0x2b   :  { %p5306_p5 = pnand %p5305_p4, %p5299_p1 }
  0x2d   :  { %5309 = shalt.err (!%p5306_p5)
}
  0x2e   :  { %48 = dma.hbm_to_vmem [thread:$0]  %s5671_s2, 32768, %s43_s16, [#allocation6], %s5363_s9, %s5363_s9, %s5364_s10  }
  0x2f   :  { %s5318_s0 = scalar_lea.vmem %s67_s18, 1024  ;;  %p5323_p7 = scmp.lt.s32.totalorder %s67_s18, %s67_s18 }
  0x30   :  { %p5319_p6 = scmp.ne.s32.totalorder %s67_s18, %s5318_s0  ;;  %p5324_p8 = scmp.lt.s32.totalorder %s5318_s0, %s5318_s0 }
  0x32   :  { %p5325_p9 = por %p5324_p8, %p5323_p7 }
  0x34   :  { %p5326_p10 = pnand %p5325_p9, %p5319_p6 }
  0x36   :  { %5329 = shalt.err (!%p5326_p10)
}
  0x37   :  { %72 = dma.hbm_to_vmem [thread:$0]  %s5673_s4, 1024, %s67_s18, [#allocation9], %s5363_s9, %s5363_s9, %s5364_s10  }
  0x38   :  { %5350 = dma.done.wait [#allocation3], 128  }
  0x39   :  { %5351 = vsyncadd [#allocation3], 4294967168 }
  0x3a   :  { %5352 = dma.done.wait [#allocation6], 36864  }
  0x3b   :  { %5353 = vsyncadd [#allocation6], 4294930432 }
  0x3c   :  { %5354 = dma.done.wait [#allocation9], 2048  }
  0x3d   :  { %5355 = vsyncadd [#allocation9], 4294965248  ;;  %v5367_v0 = vmov 0   ;;  %v94_v1 = vld [vmem:[#allocation5] sm:$0xff]  ;;  %v95_v3 = vld [vmem:[#allocation5 + $0x8] sm:$0xff]  ;;  %vm286_vm0 = vcmask 130048  }
  0x3e   :  { %322 = vmatprep.mubr.bf16.mxu0 %v5367_v0  ;;  %363 = vmatprep.mubr.bf16.mxu1 %v5367_v0  ;;  %v110_v2 = vld [vmem:[#allocation5 + $0x80] sm:$0xff]  ;;  %v111_v5 = vld [vmem:[#allocation5 + $0x88] sm:$0xff]  ;;  %v91_v7 = vld [vmem:[#allocation2] sm:$0xff] }
  0x3f   :  { %v4115_v4 = vcombine.high %v94_v1, %v110_v2  ;;  %v4114_v6 = vcombine.low %v94_v1, %v110_v2  ;;  %v96_v8 = vld [vmem:[#allocation5 + $0x10] sm:$0xff]  ;;  %v4117_v9 = vcombine.high %v95_v3, %v111_v5  ;;  %v4116_v10 = vcombine.low %v95_v3, %v111_v5  ;;  %v97_v13 = vld [vmem:[#allocation5 + $0x18] sm:$0xff]  ;;  %v98_v17 = vld [vmem:[#allocation5 + $0x20] sm:$0xff] }
  0x40   :  { %v92_v11 = vcvt.s32.f32 %v91_v7  ;;  %v112_v12 = vld [vmem:[#allocation5 + $0x90] sm:$0xff]  ;;  %v113_v14 = vld [vmem:[#allocation5 + $0x98] sm:$0xff]  ;;  %v114_v18 = vld [vmem:[#allocation5 + $0xa0] sm:$0xff] }
  0x41   :  { %304 = vmatprep.subr.bf16.mxu0 %v4115_v4  ;;  %v4119_v15 = vcombine.high %v96_v8, %v112_v12  ;;  %v4121_v16 = vcombine.high %v97_v13, %v113_v14  ;;  %345 = vmatprep.subr.bf16.mxu1 %v4117_v9  ;;  %v4118_v20 = vcombine.low %v96_v8, %v112_v12  ;;  %v99_v21 = vld [vmem:[#allocation5 + $0x28] sm:$0xff]  ;;  %v100_v26 = vld [vmem:[#allocation5 + $0x30] sm:$0xff]  ;;  %v101_v28 = vld [vmem:[#allocation5 + $0x38] sm:$0xff] }
  0x42   :  { %305 = vmatpush1.bf16.msra.mxu0 %v4114_v6  ;;  %v5433_v19 = vpack.c.bf16 %v92_v11, %v92_v11  ;;  %v115_v22 = vld [vmem:[#allocation5 + $0xa8] sm:$0xff]  ;;  %346 = vmatpush1.bf16.msra.mxu1 %v4116_v10  ;;  %v4120_v23 = vcombine.low %v97_v13, %v113_v14  ;;  %v4123_v24 = vcombine.high %v98_v17, %v114_v18  ;;  %v116_v27 = vld [vmem:[#allocation5 + $0xb0] sm:$0xff]  ;;  %v117_v30 = vld [vmem:[#allocation5 + $0xb8] sm:$0xff] }
  0x43   :  { %386 = vmatprep.subr.bf16.mxu0 %v4119_v15  ;;  %427 = vmatprep.subr.bf16.mxu1 %v4121_v16  ;;  %v4125_v25 = vcombine.high %v99_v21, %v115_v22  ;;  %v4122_v29 = vcombine.low %v98_v17, %v114_v18  ;;  %v4124_v31 = vcombine.low %v99_v21, %v115_v22  ;;  %v102_v34 = vld [vmem:[#allocation5 + $0x40] sm:$0xff]  ;;  %v103_v36 = vld [vmem:[#allocation5 + $0x48] sm:$0xff]  ;;  %v104_v42 = vld [vmem:[#allocation5 + $0x50] sm:$0xff] }
  0x44   :  { %v4127_v32 = vcombine.high %v100_v26, %v116_v27  ;;  %v4129_v33 = vcombine.high %v101_v28, %v117_v30  ;;  %v118_v35 = vld [vmem:[#allocation5 + $0xc0] sm:$0xff]  ;;  %v4126_v37 = vcombine.low %v100_v26, %v116_v27  ;;  %v119_v38 = vld [vmem:[#allocation5 + $0xc8] sm:$0xff]  ;;  %v4128_v39 = vcombine.low %v101_v28, %v117_v30  ;;  %v120_v43 = vld [vmem:[#allocation5 + $0xd0] sm:$0xff] }
  0x45   :  { %4146 = vmatmul.mubr.msk.bf16.vlgmr.msra.gmra.mxu0 %vm286_vm0, %v5433_v19  ;;  %4147 = vmatmul.mubr.msk.bf16.vlgmr.msra.gmra.mxu1 %vm286_vm0, %v5433_v19  ;;  %v4131_v40 = vcombine.high %v102_v34, %v118_v35  ;;  %v4133_v41 = vcombine.high %v103_v36, %v119_v38  ;;  %v105_v44 = vld [vmem:[#allocation5 + $0x58] sm:$0xff]  ;;  %v4130_v45 = vcombine.low %v102_v34, %v118_v35  ;;  %v106_v50 = vld [vmem:[#allocation5 + $0x60] sm:$0xff]  ;;  %v107_v52 = vld [vmem:[#allocation5 + $0x68] sm:$0xff] }
  0x46   :  { %387 = vmatpush1.bf16.msra.mxu0 %v4118_v20  ;;  %404 = vmatprep.mubr.bf16.mxu0 %v5367_v0  ;;  %v121_v46 = vld [vmem:[#allocation5 + $0xd8] sm:$0xff]  ;;  %v4132_v47 = vcombine.low %v103_v36, %v119_v38  ;;  %v4135_v48 = vcombine.high %v104_v42, %v120_v43  ;;  %v122_v51 = vld [vmem:[#allocation5 + $0xe0] sm:$0xff]  ;;  %v4134_v53 = vcombine.low %v104_v42, %v120_v43  ;;  %v123_v54 = vld [vmem:[#allocation5 + $0xe8] sm:$0xff]  ;;  %v946_v38 = vlaneseq }
  0x47   :  { %428 = vmatpush1.bf16.msra.mxu1 %v4120_v23  ;;  %445 = vmatprep.mubr.bf16.mxu1 %v5367_v0  ;;  %v4137_v49 = vcombine.high %v105_v44, %v121_v46  ;;  %v4136_v55 = vcombine.low %v105_v44, %v121_v46  ;;  %v4139_v56 = vcombine.high %v106_v50, %v122_v51  ;;  %v108_v58 = vld [vmem:[#allocation5 + $0x70] sm:$0xff]  ;;  %v109_v60 = vld [vmem:[#allocation5 + $0x78] sm:$0xff]  ;;  %v4962_v13 = vld [vmem:[#allocation7 + $0x68] sm:$0xff]  }
  0x48   :  { %468 = vmatprep.subr.bf16.mxu0 %v4123_v24  ;;  %509 = vmatprep.subr.bf16.mxu1 %v4125_v25  ;;  %v4141_v57 = vcombine.high %v107_v52, %v123_v54  ;;  %v124_v59 = vld [vmem:[#allocation5 + $0xf0] sm:$0xff]  ;;  %v125_v61 = vld [vmem:[#allocation5 + $0xf8] sm:$0xff]  ;;  %v4138_v62 = vcombine.low %v106_v50, %v122_v51  ;;  %v4140_v63 = vcombine.low %v107_v52, %v123_v54  ;;  %v4963_v14 = vld [vmem:[#allocation7 + $0xe8] sm:$0xff]  }
  0x49   :  { %v4143_v1 = vcombine.high %v108_v58, %v124_v59  ;;  %v4145_v2 = vcombine.high %v109_v60, %v125_v61  ;;  %v4142_v3 = vcombine.low %v108_v58, %v124_v59  ;;  %v4954_v4 = vld [vmem:[#allocation7 + $0x78] sm:$0xff]   ;;  %v4144_v5 = vcombine.low %v109_v60, %v125_v61  ;;  %v4958_v9 = vld [vmem:[#allocation7 + $0x70] sm:$0xff]   ;;  %v4965_v15 = vld [vmem:[#allocation7 + $0xa8] sm:$0xff]  }
  0x4a   :  { %v4955_v6 = vld [vmem:[#allocation7 + $0xf8] sm:$0xff]   ;;  %v4959_v10 = vld [vmem:[#allocation7 + $0xf0] sm:$0xff]   ;;  %v4966_v16 = vld [vmem:[#allocation7 + $0x60] sm:$0xff]  }
  0x4b   :  { %v4956_v7 = vld [vmem:[#allocation7 + $0x38] sm:$0xff]   ;;  %v4960_v11 = vld [vmem:[#allocation7 + $0x30] sm:$0xff]   ;;  %v4967_v17 = vld [vmem:[#allocation7 + $0xe0] sm:$0xff]  }
  0x4c   :  { %v4957_v8 = vld [vmem:[#allocation7 + $0xb8] sm:$0xff]   ;;  %v4961_v12 = vld [vmem:[#allocation7 + $0xb0] sm:$0xff]   ;;  %v4968_v18 = vld [vmem:[#allocation7 + $0x20] sm:$0xff]  }
  0x4d   :  { %4148 = vmatmul.mubr.msk.bf16.vlgmr.msra.gmra.mxu0 %vm286_vm0, %v5433_v19  ;;  %4149 = vmatmul.mubr.msk.bf16.vlgmr.msra.gmra.mxu1 %vm286_vm0, %v5433_v19  ;;  %v4969_v20 = vld [vmem:[#allocation7 + $0xa0] sm:$0xff]   ;;  %v4970_v21 = vld [vmem:[#allocation7 + $0x58] sm:$0xff]   ;;  %v4974_v24 = vld [vmem:[#allocation7 + $0x50] sm:$0xff]  }
  0x4e   :  { %469 = vmatpush1.bf16.msra.mxu0 %v4122_v29  ;;  %486 = vmatprep.mubr.bf16.mxu0 %v5367_v0  ;;  %v4971_v22 = vld [vmem:[#allocation7 + $0xd8] sm:$0xff]   ;;  %v4975_v25 = vld [vmem:[#allocation7 + $0xd0] sm:$0xff]   ;;  %v4978_v28 = vld [vmem:[#allocation7 + $0x48] sm:$0xff]  }
  0x4f   :  { %510 = vmatpush1.bf16.msra.mxu1 %v4124_v31  ;;  %527 = vmatprep.mubr.bf16.mxu1 %v5367_v0  ;;  %v4973_v23 = vld [vmem:[#allocation7 + $0x98] sm:$0xff]   ;;  %v4976_v26 = vld [vmem:[#allocation7 + $0x10] sm:$0xff]   ;;  %v4979_v29 = vld [vmem:[#allocation7 + $0xc8] sm:$0xff]  }
  0x50   :  { %550 = vmatprep.subr.bf16.mxu0 %v4127_v32  ;;  %591 = vmatprep.subr.bf16.mxu1 %v4129_v33  ;;  %v4977_v27 = vld [vmem:[#allocation7 + $0x90] sm:$0xff]   ;;  %v4980_v30 = vld [vmem:[#allocation7 + $0x8] sm:$0xff]   ;;  %v4982_v32 = vld [vmem:[#allocation7 + $0x40] sm:$0xff]  }
  0x51   :  { %v4981_v31 = vld [vmem:[#allocation7 + $0x88] sm:$0xff]   ;;  %v4983_v33 = vld [vmem:[#allocation7 + $0xc0] sm:$0xff]   ;;  %v4986_v36 = vld [vmem:[#allocation7 + $0x178] sm:$0xff]  }
  0x52   :  { %v4984_v34 = vld [vmem:[#allocation7] sm:$0xff]   ;;  %v4989_v58 = vld [vmem:[#allocation7 + $0x1b8] sm:$0xff]   ;;  %v4990_v59 = vld [vmem:[#allocation7 + $0x170] sm:$0xff]  }
  0x53   :  { %v4985_v35 = vld [vmem:[#allocation7 + $0x80] sm:$0xff]   ;;  %v5013_v60 = vld [vmem:[#allocation7 + $0x188] sm:$0xff]  }
  0x55   :  { %4150 = vmatmul.mubr.msk.bf16.vlgmr.msra.gmra.mxu0 %vm286_vm0, %v5433_v19  ;;  %4151 = vmatmul.mubr.msk.bf16.vlgmr.msra.gmra.mxu1 %vm286_vm0, %v5433_v19 }
  0x56   :  { %551 = vmatpush1.bf16.msra.mxu0 %v4126_v37  ;;  %568 = vmatprep.mubr.bf16.mxu0 %v5367_v0  ;;  %v4987_v37 = vld [vmem:[#allocation7 + $0x1f8] sm:$0xff]  }
  0x57   :  { %592 = vmatpush1.bf16.msra.mxu1 %v4128_v39  ;;  %609 = vmatprep.mubr.bf16.mxu1 %v5367_v0  ;;  %v5482_v39 = vand.u32 127, %v946_v38 }
  0x58   :  { %632 = vmatprep.subr.bf16.mxu0 %v4131_v40  ;;  %673 = vmatprep.subr.bf16.mxu1 %v4133_v41 }
  0x59   :  { %v949_v40 = vadd.s32 256, %v5482_v39  ;;  %v948_v41 = vadd.s32 128, %v5482_v39  ;;  %v950_v42 = vadd.s32 384, %v5482_v39  ;;  %v979_v43 = vand.u32 255, %v5482_v39 }
  0x5a   :  { %v952_v50 = vadd.s32 640, %v5482_v39 }
  0x5b   :  { %v981_v44 = vand.u32 255, %v949_v40  ;;  %v982_v46 = vand.u32 255, %v950_v42  ;;  %v5008_v40 = vld [vmem:[#allocation7 + $0x110] sm:$0xff]  }
  0x5d   :  { %4152 = vmatmul.mubr.msk.bf16.vlgmr.msra.gmra.mxu0 %vm286_vm0, %v5433_v19  ;;  %4153 = vmatmul.mubr.msk.bf16.vlgmr.msra.gmra.mxu1 %vm286_vm0, %v5433_v19  ;;  %v1014_v52 = vcvt.s32.f32 %v982_v46 }
  0x5e   :  { %633 = vmatpush1.bf16.msra.mxu0 %v4130_v45  ;;  %650 = vmatprep.mubr.bf16.mxu0 %v5367_v0  ;;  %v980_v45 = vand.u32 255, %v948_v41  ;;  %v953_v41 = vadd.s32 768, %v5482_v39 }
  0x5f   :  { %674 = vmatpush1.bf16.msra.mxu1 %v4132_v47  ;;  %691 = vmatprep.mubr.bf16.mxu1 %v5367_v0  ;;  %v1011_v47 = vcvt.s32.f32 %v979_v43  ;;  %v956_v43 = vadd.s32 1152, %v5482_v39 }
  0x60   :  { %714 = vmatprep.subr.bf16.mxu0 %v4135_v48  ;;  %755 = vmatprep.subr.bf16.mxu1 %v4137_v49  ;;  %v1013_v48 = vcvt.s32.f32 %v981_v44  ;;  %v1012_v49 = vcvt.s32.f32 %v980_v45  ;;  %v958_v44 = vadd.s32 1408, %v5482_v39 }
  0x65   :  { %4154 = vmatmul.mubr.msk.bf16.vlgmr.msra.gmra.mxu0 %vm286_vm0, %v5433_v19  ;;  %4155 = vmatmul.mubr.msk.bf16.vlgmr.msra.gmra.mxu1 %vm286_vm0, %v5433_v19 }
  0x66   :  { %715 = vmatpush1.bf16.msra.mxu0 %v4134_v53  ;;  %732 = vmatprep.mubr.bf16.mxu0 %v5367_v0  ;;  %v954_v53 = vadd.s32 896, %v5482_v39 }
  0x67   :  { %756 = vmatpush1.bf16.msra.mxu1 %v4136_v55  ;;  %773 = vmatprep.mubr.bf16.mxu1 %v5367_v0  ;;  %v4988_v55 = vld [vmem:[#allocation7 + $0x138] sm:$0xff]  }
  0x68   :  { %796 = vmatprep.subr.bf16.mxu0 %v4139_v56  ;;  %837 = vmatprep.subr.bf16.mxu1 %v4141_v57  ;;  %v5012_v56 = vld [vmem:[#allocation7 + $0x108] sm:$0xff]  }
  0x6d   :  { %4156 = vmatmul.mubr.msk.bf16.vlgmr.msra.gmra.mxu0 %vm286_vm0, %v5433_v19  ;;  %4157 = vmatmul.mubr.msk.bf16.vlgmr.msra.gmra.mxu1 %vm286_vm0, %v5433_v19 }
  0x6e   :  { %797 = vmatpush1.bf16.msra.mxu0 %v4138_v62  ;;  %814 = vmatprep.mubr.bf16.mxu0 %v5367_v0  ;;  %v984_v62 = vand.u32 255, %v952_v50 }
  0x6f   :  { %838 = vmatpush1.bf16.msra.mxu1 %v4140_v63  ;;  %855 = vmatprep.mubr.bf16.mxu1 %v5367_v0 }
  0x70   :  { %878 = vmatprep.subr.bf16.mxu0 %v4143_v1  ;;  %919 = vmatprep.subr.bf16.mxu1 %v4145_v2  ;;  %v986_v1 = vand.u32 255, %v954_v53 }
  0x75   :  { %4158 = vmatmul.mubr.msk.bf16.vlgmr.msra.gmra.mxu0 %vm286_vm0, %v5433_v19  ;;  %4159 = vmatmul.mubr.msk.bf16.vlgmr.msra.gmra.mxu1 %vm286_vm0, %v5433_v19 }
  0x76   :  { %879 = vmatpush1.bf16.msra.mxu0 %v4142_v3  ;;  %896 = vmatprep.mubr.bf16.mxu0 %v5367_v0  ;;  %v5368_v3 = vmov 1.0|1.0  }
  0x77   :  { %920 = vmatpush1.bf16.msra.mxu1 %v4144_v5  ;;  %937 = vmatprep.mubr.bf16.mxu1 %v5367_v0  ;;  %v4964_v0 = vld [vmem:[#allocation7 + $0x28] sm:$0xff]  }
  0x78   :  { %4530 = vmatprep.subr.bf16.mxu0 %v4954_v4  ;;  %4552 = vmatprep.subr.bf16.mxu1 %v4955_v6  ;;  %v4991_v4 = vld [vmem:[#allocation7 + $0x1f0] sm:$0xff]  }
  0x79   :  { %v4992_v6 = vld [vmem:[#allocation7 + $0x130] sm:$0xff]  }
  0x7d   :  { %4160 = vmatmul.mubr.msk.bf16.vlgmr.msra.gmra.mxu0 %vm286_vm0, %v5433_v19  ;;  %4161 = vmatmul.mubr.msk.bf16.vlgmr.msra.gmra.mxu1 %vm286_vm0, %v5433_v19  ;;  %v4972_v19 = vld [vmem:[#allocation7 + $0x18] sm:$0xff]  }
  0x7e   :  { %4531 = vmatpush3.bf16.msra.mxu0 %v4956_v7  ;;  %4553 = vmatpush3.bf16.msra.mxu1 %v4957_v8  ;;  %v1016_v8 = vcvt.s32.f32 %v984_v62 }
  0x7f   :  { %4532 = vmatprep.subr.bf16.mxu0 %v4958_v9  ;;  %4554 = vmatprep.subr.bf16.mxu1 %v4959_v10  ;;  %v4993_v9 = vld [vmem:[#allocation7 + $0x1b0] sm:$0xff]   ;;  %v4994_v10 = vld [vmem:[#allocation7 + $0x168] sm:$0xff]  }
  0x82   :  { %4533 = vmatpush3.bf16.msra.mxu0 %v4960_v11  ;;  %4555 = vmatpush3.bf16.msra.mxu1 %v4961_v12  ;;  %v1018_v12 = vcvt.s32.f32 %v986_v1  ;;  %v5015_v1 = vld [vmem:[#allocation7 + $0x1c0] sm:$0xff]  }
  0x83   :  { %4534 = vmatprep.subr.bf16.mxu0 %v4962_v13  ;;  %4556 = vmatprep.subr.bf16.mxu1 %v4963_v14  ;;  %v4995_v13 = vld [vmem:[#allocation7 + $0x1e8] sm:$0xff]  }
  0x86   :  { %4535 = vmatpush3.bf16.msra.mxu0 %v4964_v0  ;;  %4557 = vmatpush3.bf16.msra.mxu1 %v4965_v15  ;;  %v4996_v15 = vld [vmem:[#allocation7 + $0x128] sm:$0xff]  }
  0x87   :  { %4536 = vmatprep.subr.bf16.mxu0 %v4966_v16  ;;  %4558 = vmatprep.subr.bf16.mxu1 %v4967_v17  ;;  %v4997_v17 = vld [vmem:[#allocation7 + $0x1a8] sm:$0xff]  }
  0x8a   :  { %4537 = vmatpush3.bf16.msra.mxu0 %v4968_v18  ;;  %4559 = vmatpush3.bf16.msra.mxu1 %v4969_v20  ;;  %v4998_v18 = vld [vmem:[#allocation7 + $0x160] sm:$0xff]  }
  0x8b   :  { %4538 = vmatprep.subr.bf16.mxu0 %v4970_v21  ;;  %4560 = vmatprep.subr.bf16.mxu1 %v4971_v22  ;;  %v4999_v21 = vld [vmem:[#allocation7 + $0x1e0] sm:$0xff]  }
  0x8e   :  { %4539 = vmatpush3.bf16.msra.mxu0 %v4972_v19  ;;  %4561 = vmatpush3.bf16.msra.mxu1 %v4973_v23  ;;  %v5000_v19 = vld [vmem:[#allocation7 + $0x120] sm:$0xff]  }
  0x8f   :  { %4540 = vmatprep.subr.bf16.mxu0 %v4974_v24  ;;  %4562 = vmatprep.subr.bf16.mxu1 %v4975_v25  ;;  %v5001_v25 = vld [vmem:[#allocation7 + $0x1a0] sm:$0xff]  }
  0x92   :  { %4541 = vmatpush3.bf16.msra.mxu0 %v4976_v26  ;;  %4563 = vmatpush3.bf16.msra.mxu1 %v4977_v27  ;;  %v5002_v26 = vld [vmem:[#allocation7 + $0x158] sm:$0xff]  }
  0x93   :  { %4542 = vmatprep.subr.bf16.mxu0 %v4978_v28  ;;  %4564 = vmatprep.subr.bf16.mxu1 %v4979_v29  ;;  %v5003_v28 = vld [vmem:[#allocation7 + $0x1d8] sm:$0xff]  }
  0x96   :  { %4543 = vmatpush3.bf16.msra.mxu0 %v4980_v30  ;;  %4565 = vmatpush3.bf16.msra.mxu1 %v4981_v31  ;;  %v5004_v31 = vld [vmem:[#allocation7 + $0x118] sm:$0xff]  }
  0x97   :  { %4544 = vmatprep.subr.bf16.mxu0 %v4982_v32  ;;  %4566 = vmatprep.subr.bf16.mxu1 %v4983_v33  ;;  %v5005_v33 = vld [vmem:[#allocation7 + $0x198] sm:$0xff]  }
  0x9a   :  { %4545 = vmatpush3.bf16.msra.mxu0 %v4984_v34  ;;  %4567 = vmatpush3.bf16.msra.mxu1 %v4985_v35  ;;  %v5006_v34 = vld [vmem:[#allocation7 + $0x150] sm:$0xff]   ;;  %v951_v35 = vadd.s32 512, %v5482_v39 }
  0x9b   :  { %4574 = vmatprep.subr.bf16.mxu0 %v4986_v36  ;;  %4596 = vmatprep.subr.bf16.mxu1 %v4987_v37  ;;  %v5007_v37 = vld [vmem:[#allocation7 + $0x1d0] sm:$0xff]  }
 0x105   :  { %v324_v51 = vpop.f32.mrf.mxu0  ;;  %v365_v54 = vpop.f32.mrf.mxu1 }
 0x106   :  { %vm1043_vm1 = vcmp.eq.f32.partialorder %v324_v51, %v1011_v47  ;;  %vm1045_vm3 = vcmp.eq.f32.partialorder %v365_v54, %v1013_v48  ;;  %v983_v47 = vand.u32 255, %v951_v35  ;;  %v5009_v48 = vld [vmem:[#allocation7 + $0x190] sm:$0xff]   ;;  %v985_v51 = vand.u32 255, %v953_v41  ;;  %v5030_v35 = vld [vmem:[#allocation7 + $0x260] sm:$0xff]  }
 0x107   :  { %vm5490_vm2 = vmpackc.low %vm1043_vm1, %vm1043_vm1  ;;  %v326_v57 = vpop.f32.mrf.mxu0  ;;  %v367_v61 = vpop.f32.mrf.mxu1  ;;  %v988_v54 = vand.u32 255, %v956_v43 }
 0x108   :  { %vm5494_vm4 = vmpackc.low %vm1045_vm3, %vm1045_vm3  ;;  %vm1044_vm5 = vcmp.eq.f32.partialorder %v326_v57, %v1012_v49  ;;  %vm1046_vm7 = vcmp.eq.f32.partialorder %v367_v61, %v1014_v52  ;;  %v5010_v49 = vld [vmem:[#allocation7 + $0x148] sm:$0xff]   ;;  %v990_v57 = vand.u32 255, %v958_v44  ;;  %v5014_v61 = vld [vmem:[#allocation7 + $0x140] sm:$0xff]  }
 0x109   :  { %vm4450_vm6 = vmpackc.low %vm1044_vm5, %vm1044_vm5  ;;  %v328_v63 = vpop.f32.mrf.mxu0  ;;  %v369_v2 = vpop.f32.mrf.mxu1  ;;  %v5011_v52 = vld [vmem:[#allocation7 + $0x1c8] sm:$0xff]   ;;  %v5033_v44 = vld [vmem:[#allocation7 + $0x2a0] sm:$0xff]  }
 0x10a   :  { %vm4454_vm8 = vmpackc.low %vm1046_vm7, %vm1046_vm7  ;;  %4451 = vmatprep.mubr.msk.bf16.mxu0 %vm4450_vm6, %v5368_v3  ;;  %v1017_v63 = vcvt.s32.f32 %v985_v51 }
 0x10b   :  { %4455 = vmatprep.mubr.msk.bf16.mxu1 %vm4454_vm8, %v5368_v3  ;;  %v329_v5 = vpop.f32.mrf.mxu0  ;;  %4453 = vmatmul.mubr.msk.bf16.vlgmr.msra.gmra.mxu0 %vm5490_vm2, %v5368_v3  ;;  %v370_v7 = vpop.f32.mrf.mxu1 }
 0x10c   :  { %4457 = vmatmul.mubr.msk.bf16.vlgmr.msra.gmra.mxu1 %vm5494_vm4, %v5368_v3  ;;  %4575 = vmatpush3.bf16.msra.mxu0 %v4988_v55  ;;  %v1020_v5 = vcvt.s32.f32 %v988_v54  ;;  %v1022_v7 = vcvt.s32.f32 %v990_v57  ;;  %v5038_v57 = vld [vmem:[#allocation7 + $0x250] sm:$0xff]  }
 0x10d   :  { %4597 = vmatpush3.bf16.msra.mxu1 %v4989_v58  ;;  %4576 = vmatprep.subr.bf16.mxu0 %v4990_v59  ;;  %v5506_v11 = vpop.f32.mrf.mxu0  ;;  %v5508_v14 = vpop.f32.mrf.mxu1  ;;  %v1015_v59 = vcvt.s32.f32 %v983_v47  ;;  %v5035_v47 = vld [vmem:[#allocation7 + $0x2d8] sm:$0xff]  }
 0x10e   :  { %4598 = vmatprep.subr.bf16.mxu1 %v4991_v4  ;;  %v5016_v4 = vld [vmem:[#allocation7 + $0x100] sm:$0xff]   ;;  %vm1049_vm14 = vcmp.eq.f32.partialorder %v5508_v14, %v1017_v63 }
 0x10f   :  { %v408_v0 = vpop.f32.mrf.mxu0  ;;  %v449_v16 = vpop.f32.mrf.mxu1  ;;  %vm1047_vm13 = vcmp.eq.f32.partialorder %v5506_v11, %v1015_v59  ;;  %vm4464_vm2 = vmpackc.low %vm1049_vm14, %vm1049_vm14  ;;  %v957_v59 = vadd.s32 1280, %v5482_v39 }
 0x110   :  { %4577 = vmatpush3.bf16.msra.mxu0 %v4992_v6  ;;  %vm1048_vm9 = vcmp.eq.f32.partialorder %v408_v0, %v1016_v8  ;;  %vm1050_vm11 = vcmp.eq.f32.partialorder %v449_v16, %v1018_v12  ;;  %v5020_v0 = vld [vmem:[#allocation7 + $0x238] sm:$0xff]   ;;  %vm4460_vm0 = vmpackc.low %vm1047_vm13, %vm1047_vm13 }
 0x111   :  { %4599 = vmatpush3.bf16.msra.mxu1 %v4993_v9  ;;  %4578 = vmatprep.subr.bf16.mxu0 %v4994_v10  ;;  %vm4458_vm10 = vmpackc.low %vm1048_vm9, %vm1048_vm9  ;;  %v410_v20 = vpop.f32.mrf.mxu0  ;;  %v451_v22 = vpop.f32.mrf.mxu1  ;;  %v5017_v9 = vld [vmem:[#allocation7 + $0x180] sm:$0xff]   ;;  %v5018_v10 = vld [vmem:[#allocation7 + $0x278] sm:$0xff]  }
 0x112   :  { %4600 = vmatprep.subr.bf16.mxu1 %v4995_v13  ;;  %vm4462_vm12 = vmpackc.low %vm1050_vm11, %vm1050_vm11  ;;  %4459 = vmatprep.mubr.msk.bf16.mxu0 %vm4458_vm10, %v5368_v3  ;;  %v5019_v13 = vld [vmem:[#allocation7 + $0x2f8] sm:$0xff]   ;;  %v5023_v20 = vld [vmem:[#allocation7 + $0x2f0] sm:$0xff]  }
 0x113   :  { %v411_v23 = vpop.f32.mrf.mxu0  ;;  %4463 = vmatprep.mubr.msk.bf16.mxu1 %vm4462_vm12, %v5368_v3  ;;  %v452_v24 = vpop.f32.mrf.mxu1  ;;  %v5021_v16 = vld [vmem:[#allocation7 + $0x2b8] sm:$0xff]  }
 0x114   :  { %4579 = vmatpush3.bf16.msra.mxu0 %v4996_v15  ;;  %v5026_v23 = vld [vmem:[#allocation7 + $0x268] sm:$0xff]  }
 0x115   :  { %4601 = vmatpush3.bf16.msra.mxu1 %v4997_v17  ;;  %4580 = vmatprep.subr.bf16.mxu0 %v4998_v18  ;;  %v5512_v27 = vpop.f32.mrf.mxu0  ;;  %v5514_v29 = vpop.f32.mrf.mxu1  ;;  %v5022_v17 = vld [vmem:[#allocation7 + $0x270] sm:$0xff]  }
 0x116   :  { %4602 = vmatprep.subr.bf16.mxu1 %v4999_v21  ;;  %v5024_v21 = vld [vmem:[#allocation7 + $0x230] sm:$0xff]  }
 0x117   :  { %v5516_v30 = vpop.f32.mrf.mxu0  ;;  %v5518_v32 = vpop.f32.mrf.mxu1 }
 0x118   :  { %4581 = vmatpush3.bf16.msra.mxu0 %v5000_v19  ;;  %vm1052_vm15 = vcmp.eq.f32.partialorder %v5516_v30, %v1020_v5  ;;  %vm1054_vm1 = vcmp.eq.f32.partialorder %v5518_v32, %v1022_v7  ;;  %v5025_v19 = vld [vmem:[#allocation7 + $0x2b0] sm:$0xff]   ;;  %v5028_v32 = vld [vmem:[#allocation7 + $0x228] sm:$0xff]   ;;  %v989_v7 = vand.u32 255, %v957_v59  ;;  %v5063_v59 = vld [vmem:[#allocation7 + $0x3e0] sm:$0xff]  }
 0x119   :  { %4603 = vmatpush3.bf16.msra.mxu1 %v5001_v25  ;;  %4582 = vmatprep.subr.bf16.mxu0 %v5002_v26  ;;  %v492_v36 = vpop.f32.mrf.mxu0  ;;  %v533_v42 = vpop.f32.mrf.mxu1  ;;  %vm4466_vm3 = vmpackc.low %vm1052_vm15, %vm1052_vm15 }
 0x11a   :  { %4604 = vmatprep.subr.bf16.mxu1 %v5003_v28  ;;  %vm4470_vm4 = vmpackc.low %vm1054_vm1, %vm1054_vm1  ;;  %v5027_v28 = vld [vmem:[#allocation7 + $0x2e8] sm:$0xff]   ;;  %v5032_v42 = vld [vmem:[#allocation7 + $0x220] sm:$0xff]  }
 0x11b   :  { %v493_v45 = vpop.f32.mrf.mxu0  ;;  %v534_v46 = vpop.f32.mrf.mxu1 }
 0x11c   :  { %4583 = vmatpush3.bf16.msra.mxu0 %v5004_v31  ;;  %v5034_v45 = vld [vmem:[#allocation7 + $0x258] sm:$0xff]  }
 0x11d   :  { %4605 = vmatpush3.bf16.msra.mxu1 %v5005_v33  ;;  %4584 = vmatprep.subr.bf16.mxu0 %v5006_v34  ;;  %v5524_v50 = vpop.f32.mrf.mxu0  ;;  %v5526_v53 = vpop.f32.mrf.mxu1  ;;  %v5029_v34 = vld [vmem:[#allocation7 + $0x2a8] sm:$0xff]  }
 0x11e   :  { %4606 = vmatprep.subr.bf16.mxu1 %v5007_v37  ;;  %v5031_v37 = vld [vmem:[#allocation7 + $0x2e0] sm:$0xff]  }
 0x11f   :  { %v5528_v55 = vpop.f32.mrf.mxu0  ;;  %v5530_v58 = vpop.f32.mrf.mxu1 }
 0x120   :  { %4585 = vmatpush3.bf16.msra.mxu0 %v5008_v40 }
 0x121   :  { %4607 = vmatpush3.bf16.msra.mxu1 %v5009_v48  ;;  %4586 = vmatprep.subr.bf16.mxu0 %v5010_v49  ;;  %v574_v62 = vpop.f32.mrf.mxu0  ;;  %v615_v2 = vpop.f32.mrf.mxu1  ;;  %v955_v48 = vadd.s32 1024, %v5482_v39 }
 0x122   :  { %4608 = vmatprep.subr.bf16.mxu1 %v5011_v52  ;;  %v5036_v52 = vld [vmem:[#allocation7 + $0x218] sm:$0xff]   ;;  %v5040_v2 = vld [vmem:[#allocation7 + $0x210] sm:$0xff]  }
 0x123   :  { %v575_v6 = vpop.f32.mrf.mxu0  ;;  %v616_v8 = vpop.f32.mrf.mxu1  ;;  %v987_v62 = vand.u32 255, %v955_v48  ;;  %v5057_v48 = vld [vmem:[#allocation7 + $0x3b0] sm:$0xff]  }
 0x124   :  { %4587 = vmatpush3.bf16.msra.mxu0 %v5012_v56  ;;  %v5037_v56 = vld [vmem:[#allocation7 + $0x298] sm:$0xff]   ;;  %v5041_v6 = vld [vmem:[#allocation7 + $0x290] sm:$0xff]   ;;  %v5042_v8 = vld [vmem:[#allocation7 + $0x248] sm:$0xff]  }
 0x125   :  { %4609 = vmatpush3.bf16.msra.mxu1 %v5013_v60  ;;  %4588 = vmatprep.subr.bf16.mxu0 %v5014_v61  ;;  %v5533_v12 = vpop.f32.mrf.mxu0  ;;  %v5536_v15 = vpop.f32.mrf.mxu1  ;;  %v5039_v61 = vld [vmem:[#allocation7 + $0x2d0] sm:$0xff]  }
 0x126   :  { %4610 = vmatprep.subr.bf16.mxu1 %v5015_v1 }
 0x127   :  { %v5539_v18 = vpop.f32.mrf.mxu0  ;;  %v5542_v11 = vpop.f32.mrf.mxu1 }
 0x128   :  { %4589 = vmatpush3.bf16.msra.mxu0 %v5016_v4  ;;  %v960_v4 = vadd.s32 1664, %v5482_v39 }
 0x129   :  { %4611 = vmatpush3.bf16.msra.mxu1 %v5017_v9  ;;  %4618 = vmatprep.subr.bf16.mxu0 %v5018_v10  ;;  %v656_v14 = vpop.f32.mrf.mxu0  ;;  %v697_v22 = vpop.f32.mrf.mxu1  ;;  %v962_v9 = vadd.s32 1920, %v5482_v39 }
 0x12a   :  { %4640 = vmatprep.subr.bf16.mxu1 %v5019_v13  ;;  %v5043_v13 = vld [vmem:[#allocation7 + $0x2c8] sm:$0xff]   ;;  %v1021_v22 = vcvt.s32.f32 %v989_v7  ;;  %v961_v7 = vadd.s32 1792, %v5482_v39 }
 0x12b   :  { %4461 = vmatmul.mubr.msk.bf16.vlgmr.msra.gmra.mxu0 %vm4460_vm0, %v5368_v3  ;;  %v657_v24 = vpop.f32.mrf.mxu0  ;;  %v698_v25 = vpop.f32.mrf.mxu1  ;;  %v5044_v14 = vld [vmem:[#allocation7 + $0x208] sm:$0xff]  }
 0x12c   :  { %4465 = vmatmul.mubr.msk.bf16.vlgmr.msra.gmra.mxu1 %vm4464_vm2, %v5368_v3  ;;  %4619 = vmatpush3.bf16.msra.mxu0 %v5020_v0  ;;  %v994_v24 = vand.u32 255, %v962_v9  ;;  %vm1053_vm6 = vcmp.eq.f32.partialorder %v5514_v29, %v1021_v22  ;;  %v5056_v29 = vld [vmem:[#allocation7 + $0x330] sm:$0xff]   ;;  %v964_v9 = vadd.s32 2176, %v5482_v39  ;;  %v993_v22 = vand.u32 255, %v961_v7 }
 0x12d   :  { %4641 = vmatpush3.bf16.msra.mxu1 %v5021_v16  ;;  %4620 = vmatprep.subr.bf16.mxu0 %v5022_v17  ;;  %v5546_v26 = vpop.f32.mrf.mxu0  ;;  %v5549_v30 = vpop.f32.mrf.mxu1  ;;  %v1019_v16 = vcvt.s32.f32 %v987_v62  ;;  %vm4472_vm8 = vmpackc.low %vm1053_vm6, %vm1053_vm6  ;;  %v5066_v62 = vld [vmem:[#allocation7 + $0x358] sm:$0xff]   ;;  %v5105_v7 = vld [vmem:[#allocation7 + $0x490] sm:$0xff]  }
 0x12e   :  { %4642 = vmatprep.subr.bf16.mxu1 %v5023_v20  ;;  %4467 = vmatprep.mubr.msk.bf16.mxu0 %vm4466_vm3, %v5368_v3  ;;  %v992_v20 = vand.u32 255, %v960_v4  ;;  %v5070_v4 = vld [vmem:[#allocation7 + $0x350] sm:$0xff]  }
 0x12f   :  { %4471 = vmatprep.mubr.msk.bf16.mxu1 %vm4470_vm4, %v5368_v3  ;;  %v5552_v31 = vpop.f32.mrf.mxu0  ;;  %v5554_v33 = vpop.f32.mrf.mxu1  ;;  %vm1051_vm5 = vcmp.eq.f32.partialorder %v5512_v27, %v1019_v16  ;;  %v5055_v27 = vld [vmem:[#allocation7 + $0x3f0] sm:$0xff]  }
 0x130   :  { %4621 = vmatpush3.bf16.msra.mxu0 %v5024_v21  ;;  %vm4468_vm7 = vmpackc.low %vm1051_vm5, %vm1051_vm5  ;;  %v5073_v16 = vld [vmem:[#allocation7 + $0x390] sm:$0xff]  }
 0x131   :  { %4643 = vmatpush3.bf16.msra.mxu1 %v5025_v19  ;;  %4622 = vmatprep.subr.bf16.mxu0 %v5026_v23  ;;  %v738_v36 = vpop.f32.mrf.mxu0  ;;  %v779_v40 = vpop.f32.mrf.mxu1  ;;  %v5045_v19 = vld [vmem:[#allocation7 + $0x288] sm:$0xff]   ;;  %v5046_v23 = vld [vmem:[#allocation7 + $0x240] sm:$0xff]  }
 0x132   :  { %4644 = vmatprep.subr.bf16.mxu1 %v5027_v28  ;;  %v5047_v28 = vld [vmem:[#allocation7 + $0x2c0] sm:$0xff]  }
 0x133   :  { %v739_v41 = vpop.f32.mrf.mxu0  ;;  %v780_v43 = vpop.f32.mrf.mxu1  ;;  %v5049_v36 = vld [vmem:[#allocation7 + $0x280] sm:$0xff]  }
 0x134   :  { %4623 = vmatpush3.bf16.msra.mxu0 %v5028_v32  ;;  %v5048_v32 = vld [vmem:[#allocation7 + $0x200] sm:$0xff]   ;;  %v5050_v41 = vld [vmem:[#allocation7 + $0x378] sm:$0xff]   ;;  %v1026_v43 = vcvt.s32.f32 %v994_v24  ;;  %v996_v24 = vand.u32 255, %v964_v9  ;;  %v970_v9 = vadd.s32 2944, %v5482_v39 }
 0x135   :  { %4645 = vmatpush3.bf16.msra.mxu1 %v5029_v34  ;;  %4624 = vmatprep.subr.bf16.mxu0 %v5030_v35  ;;  %v5556_v46 = vpop.f32.mrf.mxu0  ;;  %v5559_v49 = vpop.f32.mrf.mxu1 }
 0x136   :  { %4646 = vmatprep.subr.bf16.mxu1 %v5031_v37  ;;  %v1024_v37 = vcvt.s32.f32 %v992_v20  ;;  %vm1058_vm10 = vcmp.eq.f32.partialorder %v5530_v58, %v1026_v43  ;;  %v5061_v58 = vld [vmem:[#allocation7 + $0x3a8] sm:$0xff]   ;;  %v966_v20 = vadd.s32 2432, %v5482_v39 }
 0x137   :  { %v5561_v51 = vpop.f32.mrf.mxu0  ;;  %v5563_v54 = vpop.f32.mrf.mxu1  ;;  %vm4478_vm12 = vmpackc.low %vm1058_vm10, %vm1058_vm10 }
 0x138   :  { %4625 = vmatpush3.bf16.msra.mxu0 %v5032_v42  ;;  %v5051_v42 = vld [vmem:[#allocation7 + $0x3f8] sm:$0xff]   ;;  %vm1056_vm9 = vcmp.eq.f32.partialorder %v5528_v55, %v1024_v37  ;;  %v5060_v55 = vld [vmem:[#allocation7 + $0x328] sm:$0xff]   ;;  %v5080_v37 = vld [vmem:[#allocation7 + $0x300] sm:$0xff]  }
 0x139   :  { %4647 = vmatpush3.bf16.msra.mxu1 %v5033_v44  ;;  %4626 = vmatprep.subr.bf16.mxu0 %v5034_v45  ;;  %v820_v60 = vpop.f32.mrf.mxu0  ;;  %v861_v63 = vpop.f32.mrf.mxu1  ;;  %v5052_v44 = vld [vmem:[#allocation7 + $0x338] sm:$0xff]   ;;  %vm4474_vm11 = vmpackc.low %vm1056_vm9, %vm1056_vm9 }
 0x13a   :  { %4648 = vmatprep.subr.bf16.mxu1 %v5035_v47  ;;  %v5053_v45 = vld [vmem:[#allocation7 + $0x3b8] sm:$0xff]   ;;  %v5054_v47 = vld [vmem:[#allocation7 + $0x370] sm:$0xff]   ;;  %v5064_v60 = vld [vmem:[#allocation7 + $0x320] sm:$0xff]  }
 0x13b   :  { %v821_v1 = vpop.f32.mrf.mxu0  ;;  %v862_v5 = vpop.f32.mrf.mxu1  ;;  %v5067_v63 = vld [vmem:[#allocation7 + $0x3d8] sm:$0xff]  }
 0x13c   :  { %4627 = vmatpush3.bf16.msra.mxu0 %v5036_v52  ;;  %v5058_v52 = vld [vmem:[#allocation7 + $0x368] sm:$0xff]   ;;  %v5068_v1 = vld [vmem:[#allocation7 + $0x318] sm:$0xff]   ;;  %v959_v5 = vadd.s32 1536, %v5482_v39 }
 0x13d   :  { %4649 = vmatpush3.bf16.msra.mxu1 %v5037_v56  ;;  %4628 = vmatprep.subr.bf16.mxu0 %v5038_v57  ;;  %v5568_v10 = vpop.f32.mrf.mxu0  ;;  %v5570_v0 = vpop.f32.mrf.mxu1  ;;  %v5059_v56 = vld [vmem:[#allocation7 + $0x3e8] sm:$0xff]   ;;  %v5062_v57 = vld [vmem:[#allocation7 + $0x360] sm:$0xff]  }
 0x13e   :  { %4650 = vmatprep.subr.bf16.mxu1 %v5039_v61  ;;  %v5065_v61 = vld [vmem:[#allocation7 + $0x3a0] sm:$0xff]  }
 0x13f   :  { %v5572_v17 = vpop.f32.mrf.mxu0  ;;  %v5574_v21 = vpop.f32.mrf.mxu1 }
 0x140   :  { %4629 = vmatpush3.bf16.msra.mxu0 %v5040_v2  ;;  %v5069_v2 = vld [vmem:[#allocation7 + $0x398] sm:$0xff]  }
 0x141   :  { %4651 = vmatpush3.bf16.msra.mxu1 %v5041_v6  ;;  %4630 = vmatprep.subr.bf16.mxu0 %v5042_v8  ;;  %v902_v25 = vpop.f32.mrf.mxu0  ;;  %v943_v34 = vpop.f32.mrf.mxu1  ;;  %v5071_v6 = vld [vmem:[#allocation7 + $0x3d0] sm:$0xff]  }
 0x142   :  { %4652 = vmatprep.subr.bf16.mxu1 %v5043_v13  ;;  %v5072_v8 = vld [vmem:[#allocation7 + $0x310] sm:$0xff]   ;;  %v991_v13 = vand.u32 255, %v959_v5  ;;  %v5077_v25 = vld [vmem:[#allocation7 + $0x388] sm:$0xff]   ;;  %v1025_v34 = vcvt.s32.f32 %v993_v22 }
 0x143   :  { %v903_v35 = vpop.f32.mrf.mxu0  ;;  %v944_v40 = vpop.f32.mrf.mxu1  ;;  %v5104_v5 = vld [vmem:[#allocation7 + $0x410] sm:$0xff]  }
 0x144   :  { %4631 = vmatpush3.bf16.msra.mxu0 %v5044_v14  ;;  %v5074_v14 = vld [vmem:[#allocation7 + $0x348] sm:$0xff]   ;;  %v5079_v35 = vld [vmem:[#allocation7 + $0x3c0] sm:$0xff]   ;;  %v1028_v40 = vcvt.s32.f32 %v996_v24  ;;  %vm1057_vm13 = vcmp.eq.f32.partialorder %v5526_v53, %v1025_v34  ;;  %v5089_v53 = vld [vmem:[#allocation7 + $0x4b0] sm:$0xff]   ;;  %v1002_v24 = vand.u32 255, %v970_v9 }
 0x145   :  { %4653 = vmatpush3.bf16.msra.mxu1 %v5045_v19  ;;  %4632 = vmatprep.subr.bf16.mxu0 %v5046_v23  ;;  %v5075_v19 = vld [vmem:[#allocation7 + $0x3c8] sm:$0xff]   ;;  %vm4480_vm0 = vmpackc.low %vm1057_vm13, %vm1057_vm13  ;;  %v5112_v34 = vld [vmem:[#allocation7 + $0x400] sm:$0xff]  }
 0x146   :  { %4654 = vmatprep.subr.bf16.mxu1 %v5047_v28  ;;  %v5076_v23 = vld [vmem:[#allocation7 + $0x308] sm:$0xff]   ;;  %v5078_v28 = vld [vmem:[#allocation7 + $0x340] sm:$0xff]   ;;  %vm1060_vm15 = vcmp.eq.f32.partialorder %v5539_v18, %v1028_v40  ;;  %v1034_v40 = vcvt.s32.f32 %v1002_v24  ;;  %v5146_v24 = vld [vmem:[#allocation7 + $0x678] sm:$0xff]  }
 0x147   :  { %vm4482_vm3 = vmpackc.low %vm1060_vm15, %vm1060_vm15  ;;  %v5090_v18 = vld [vmem:[#allocation7 + $0x468] sm:$0xff]   ;;  %v5142_v9 = vld [vmem:[#allocation7 + $0x540] sm:$0xff]  }
 0x148   :  { %4633 = vmatpush3.bf16.msra.mxu0 %v5048_v32  ;;  %v998_v32 = vand.u32 255, %v966_v20  ;;  %v5108_v20 = vld [vmem:[#allocation7 + $0x408] sm:$0xff]   ;;  %vm1066_vm9 = vcmp.eq.f32.partialorder %v5554_v33, %v1034_v40 }
 0x149   :  { %4655 = vmatpush3.bf16.msra.mxu1 %v5049_v36  ;;  %4662 = vmatprep.subr.bf16.mxu0 %v5050_v41  ;;  %v1023_v36 = vcvt.s32.f32 %v991_v13  ;;  %v5081_v41 = vld [vmem:[#allocation7 + $0x380] sm:$0xff]   ;;  %v5124_v33 = vld [vmem:[#allocation7 + $0x528] sm:$0xff]  }
 0x14a   :  { %4684 = vmatprep.subr.bf16.mxu1 %v5051_v42  ;;  %v5082_v42 = vld [vmem:[#allocation7 + $0x478] sm:$0xff]   ;;  %v1030_v43 = vcvt.s32.f32 %v998_v32  ;;  %v5157_v40 = vld [vmem:[#allocation7 + $0x6a8] sm:$0xff]  }
 0x14b   :  { %4469 = vmatmul.mubr.msk.bf16.vlgmr.msra.gmra.mxu0 %vm4468_vm7, %v5368_v3  ;;  %vm1055_vm14 = vcmp.eq.f32.partialorder %v5524_v50, %v1023_v36  ;;  %v5088_v50 = vld [vmem:[#allocation7 + $0x430] sm:$0xff]   ;;  %v5113_v36 = vld [vmem:[#allocation7 + $0x480] sm:$0xff]  }
 0x14c   :  { %4473 = vmatmul.mubr.msk.bf16.vlgmr.msra.gmra.mxu1 %vm4472_vm8, %v5368_v3  ;;  %4663 = vmatpush3.bf16.msra.mxu0 %v5052_v44  ;;  %v5083_v44 = vld [vmem:[#allocation7 + $0x4f8] sm:$0xff]   ;;  %vm1062_vm1 = vcmp.eq.f32.partialorder %v5542_v11, %v1030_v43  ;;  %vm4476_vm2 = vmpackc.low %vm1055_vm14, %vm1055_vm14  ;;  %v5092_v11 = vld [vmem:[#allocation7 + $0x428] sm:$0xff]  }
 0x14d   :  { %4685 = vmatpush3.bf16.msra.mxu1 %v5053_v45  ;;  %4664 = vmatprep.subr.bf16.mxu0 %v5054_v47  ;;  %v5084_v45 = vld [vmem:[#allocation7 + $0x438] sm:$0xff]   ;;  %vm4486_vm4 = vmpackc.low %vm1062_vm1, %vm1062_vm1 }
 0x14e   :  { %4686 = vmatprep.subr.bf16.mxu1 %v5055_v27  ;;  %4475 = vmatprep.mubr.msk.bf16.mxu0 %vm4474_vm11, %v5368_v3  ;;  %v5085_v47 = vld [vmem:[#allocation7 + $0x4b8] sm:$0xff]   ;;  %v5086_v27 = vld [vmem:[#allocation7 + $0x470] sm:$0xff]  }
 0x14f   :  { %4479 = vmatprep.mubr.msk.bf16.mxu1 %vm4478_vm12, %v5368_v3  ;;  %v5117_v43 = vld [vmem:[#allocation7 + $0x5b8] sm:$0xff]   ;;  %vm4494_vm12 = vmpackc.low %vm1066_vm9, %vm1066_vm9 }
 0x150   :  { %4665 = vmatpush3.bf16.msra.mxu0 %v5056_v29  ;;  %v5087_v29 = vld [vmem:[#allocation7 + $0x4f0] sm:$0xff]  }
 0x151   :  { %4687 = vmatpush3.bf16.msra.mxu1 %v5057_v48  ;;  %4666 = vmatprep.subr.bf16.mxu0 %v5058_v52  ;;  %v5091_v48 = vld [vmem:[#allocation7 + $0x4e8] sm:$0xff]  }
 0x152   :  { %4688 = vmatprep.subr.bf16.mxu1 %v5059_v56  ;;  %v5093_v52 = vld [vmem:[#allocation7 + $0x4a8] sm:$0xff]   ;;  %v5094_v56 = vld [vmem:[#allocation7 + $0x460] sm:$0xff]  }
 0x154   :  { %4667 = vmatpush3.bf16.msra.mxu0 %v5060_v55  ;;  %v5095_v55 = vld [vmem:[#allocation7 + $0x4e0] sm:$0xff]  }
 0x155   :  { %4689 = vmatpush3.bf16.msra.mxu1 %v5061_v58  ;;  %4668 = vmatprep.subr.bf16.mxu0 %v5062_v57  ;;  %v5096_v58 = vld [vmem:[#allocation7 + $0x420] sm:$0xff]  }
 0x156   :  { %4690 = vmatprep.subr.bf16.mxu1 %v5063_v59  ;;  %v5097_v57 = vld [vmem:[#allocation7 + $0x4a0] sm:$0xff]   ;;  %v5098_v59 = vld [vmem:[#allocation7 + $0x458] sm:$0xff]  }
 0x158   :  { %4669 = vmatpush3.bf16.msra.mxu0 %v5064_v60  ;;  %v5099_v60 = vld [vmem:[#allocation7 + $0x4d8] sm:$0xff]  }
 0x159   :  { %4691 = vmatpush3.bf16.msra.mxu1 %v5065_v61  ;;  %4670 = vmatprep.subr.bf16.mxu0 %v5066_v62  ;;  %v5100_v61 = vld [vmem:[#allocation7 + $0x418] sm:$0xff]  }
 0x15a   :  { %4692 = vmatprep.subr.bf16.mxu1 %v5067_v63  ;;  %v5101_v62 = vld [vmem:[#allocation7 + $0x498] sm:$0xff]   ;;  %v5102_v63 = vld [vmem:[#allocation7 + $0x450] sm:$0xff]  }
 0x15c   :  { %4671 = vmatpush3.bf16.msra.mxu0 %v5068_v1  ;;  %v5103_v1 = vld [vmem:[#allocation7 + $0x4d0] sm:$0xff]  }
 0x15d   :  { %4693 = vmatpush3.bf16.msra.mxu1 %v5069_v2  ;;  %4672 = vmatprep.subr.bf16.mxu0 %v5070_v4  ;;  %v965_v2 = vadd.s32 2304, %v5482_v39  ;;  %v963_v4 = vadd.s32 2048, %v5482_v39 }
 0x15e   :  { %4694 = vmatprep.subr.bf16.mxu1 %v5071_v6  ;;  %v968_v6 = vadd.s32 2688, %v5482_v39 }
 0x15f   :  { %v997_v13 = vand.u32 255, %v965_v2  ;;  %v5139_v2 = vld [vmem:[#allocation7 + $0x5c8] sm:$0xff]  }
 0x160   :  { %4673 = vmatpush3.bf16.msra.mxu0 %v5072_v8  ;;  %v5106_v8 = vld [vmem:[#allocation7 + $0x448] sm:$0xff]   ;;  %v1000_v22 = vand.u32 255, %v968_v6 }
 0x161   :  { %4695 = vmatpush3.bf16.msra.mxu1 %v5073_v16  ;;  %4674 = vmatprep.subr.bf16.mxu0 %v5074_v14  ;;  %v5107_v16 = vld [vmem:[#allocation7 + $0x4c8] sm:$0xff]   ;;  %v995_v14 = vand.u32 255, %v963_v4 }
 0x162   :  { %4696 = vmatprep.subr.bf16.mxu1 %v5075_v19  ;;  %v5109_v19 = vld [vmem:[#allocation7 + $0x488] sm:$0xff]  }
 0x163   :  { %v1027_v32 = vcvt.s32.f32 %v995_v14  ;;  %v5140_v6 = vld [vmem:[#allocation7 + $0x508] sm:$0xff]  }
 0x164   :  { %4675 = vmatpush3.bf16.msra.mxu0 %v5076_v23  ;;  %v5110_v23 = vld [vmem:[#allocation7 + $0x440] sm:$0xff]  }
 0x165   :  { %4697 = vmatpush3.bf16.msra.mxu1 %v5077_v25  ;;  %4676 = vmatprep.subr.bf16.mxu0 %v5078_v28  ;;  %v1029_v25 = vcvt.s32.f32 %v997_v13  ;;  %v5111_v28 = vld [vmem:[#allocation7 + $0x4c0] sm:$0xff]   ;;  %vm1059_vm6 = vcmp.eq.f32.partialorder %v5533_v12, %v1027_v32  ;;  %v5120_v12 = vld [vmem:[#allocation7 + $0x530] sm:$0xff]   ;;  %v5148_v32 = vld [vmem:[#allocation7 + $0x638] sm:$0xff]  }
 0x166   :  { %4698 = vmatprep.subr.bf16.mxu1 %v5079_v35  ;;  %v1032_v35 = vcvt.s32.f32 %v1000_v22  ;;  %vm4484_vm10 = vmpackc.low %vm1059_vm6, %vm1059_vm6  ;;  %v5144_v22 = vld [vmem:[#allocation7 + $0x500] sm:$0xff]  }
 0x167   :  { %vm1061_vm5 = vcmp.eq.f32.partialorder %v5536_v15, %v1029_v25  ;;  %v5121_v15 = vld [vmem:[#allocation7 + $0x5b0] sm:$0xff]  }
 0x168   :  { %4677 = vmatpush3.bf16.msra.mxu0 %v5080_v37  ;;  %v5114_v37 = vld [vmem:[#allocation7 + $0x578] sm:$0xff]   ;;  %vm1064_vm7 = vcmp.eq.f32.partialorder %v5552_v31, %v1032_v35  ;;  %vm4488_vm8 = vmpackc.low %vm1061_vm5, %vm1061_vm5  ;;  %v5122_v31 = vld [vmem:[#allocation7 + $0x568] sm:$0xff]  }
 0x169   :  { %4699 = vmatpush3.bf16.msra.mxu1 %v5081_v41  ;;  %4706 = vmatprep.subr.bf16.mxu0 %v5082_v42  ;;  %v5115_v41 = vld [vmem:[#allocation7 + $0x5f8] sm:$0xff]   ;;  %vm4490_vm11 = vmpackc.low %vm1064_vm7, %vm1064_vm7  ;;  %v5150_v35 = vld [vmem:[#allocation7 + $0x670] sm:$0xff]  }
 0x16a   :  { %4728 = vmatprep.subr.bf16.mxu1 %v5083_v44  ;;  %v5116_v42 = vld [vmem:[#allocation7 + $0x538] sm:$0xff]   ;;  %v5118_v44 = vld [vmem:[#allocation7 + $0x570] sm:$0xff]  }
 0x16b   :  { %4477 = vmatmul.mubr.msk.bf16.vlgmr.msra.gmra.mxu0 %vm4476_vm2, %v5368_v3 }
 0x16c   :  { %4481 = vmatmul.mubr.msk.bf16.vlgmr.msra.gmra.mxu1 %vm4480_vm0, %v5368_v3  ;;  %4707 = vmatpush3.bf16.msra.mxu0 %v5084_v45  ;;  %v5119_v45 = vld [vmem:[#allocation7 + $0x5f0] sm:$0xff]  }
 0x16d   :  { %4729 = vmatpush3.bf16.msra.mxu1 %v5085_v47  ;;  %4708 = vmatprep.subr.bf16.mxu0 %v5086_v27  ;;  %v5123_v47 = vld [vmem:[#allocation7 + $0x5e8] sm:$0xff]  }
 0x16e   :  { %4730 = vmatprep.subr.bf16.mxu1 %v5087_v29  ;;  %4483 = vmatprep.mubr.msk.bf16.mxu0 %vm4482_vm3, %v5368_v3  ;;  %v5125_v27 = vld [vmem:[#allocation7 + $0x5a8] sm:$0xff]   ;;  %v5126_v29 = vld [vmem:[#allocation7 + $0x560] sm:$0xff]  }
 0x16f   :  { %4487 = vmatprep.mubr.msk.bf16.mxu1 %vm4486_vm4, %v5368_v3 }
 0x170   :  { %4709 = vmatpush3.bf16.msra.mxu0 %v5088_v50  ;;  %v5127_v50 = vld [vmem:[#allocation7 + $0x5e0] sm:$0xff]  }
 0x171   :  { %4731 = vmatpush3.bf16.msra.mxu1 %v5089_v53  ;;  %4710 = vmatprep.subr.bf16.mxu0 %v5090_v18  ;;  %v5128_v53 = vld [vmem:[#allocation7 + $0x520] sm:$0xff]  }
 0x172   :  { %4732 = vmatprep.subr.bf16.mxu1 %v5091_v48  ;;  %v5129_v18 = vld [vmem:[#allocation7 + $0x5a0] sm:$0xff]   ;;  %v5130_v48 = vld [vmem:[#allocation7 + $0x558] sm:$0xff]  }
 0x174   :  { %4711 = vmatpush3.bf16.msra.mxu0 %v5092_v11  ;;  %v5131_v11 = vld [vmem:[#allocation7 + $0x5d8] sm:$0xff]  }
 0x175   :  { %4733 = vmatpush3.bf16.msra.mxu1 %v5093_v52  ;;  %4712 = vmatprep.subr.bf16.mxu0 %v5094_v56  ;;  %v5132_v52 = vld [vmem:[#allocation7 + $0x518] sm:$0xff]  }
 0x176   :  { %4734 = vmatprep.subr.bf16.mxu1 %v5095_v55  ;;  %v5133_v56 = vld [vmem:[#allocation7 + $0x598] sm:$0xff]   ;;  %v5134_v55 = vld [vmem:[#allocation7 + $0x550] sm:$0xff]  }
 0x178   :  { %4713 = vmatpush3.bf16.msra.mxu0 %v5096_v58  ;;  %v5135_v58 = vld [vmem:[#allocation7 + $0x5d0] sm:$0xff]  }
 0x179   :  { %4735 = vmatpush3.bf16.msra.mxu1 %v5097_v57  ;;  %4714 = vmatprep.subr.bf16.mxu0 %v5098_v59  ;;  %v967_v57 = vadd.s32 2560, %v5482_v39  ;;  %v969_v59 = vadd.s32 2816, %v5482_v39 }
 0x17a   :  { %4736 = vmatprep.subr.bf16.mxu1 %v5099_v60  ;;  %v5136_v60 = vld [vmem:[#allocation7 + $0x510] sm:$0xff]  }
 0x17b   :  { %v999_v4 = vand.u32 255, %v967_v57 }
 0x17c   :  { %4715 = vmatpush3.bf16.msra.mxu0 %v5100_v61  ;;  %v972_v61 = vadd.s32 3200, %v5482_v39 }
 0x17d   :  { %4737 = vmatpush3.bf16.msra.mxu1 %v5101_v62  ;;  %4716 = vmatprep.subr.bf16.mxu0 %v5102_v63  ;;  %v5137_v62 = vld [vmem:[#allocation7 + $0x590] sm:$0xff]   ;;  %v5138_v63 = vld [vmem:[#allocation7 + $0x548] sm:$0xff]   ;;  %v1031_v14 = vcvt.s32.f32 %v999_v4 }
 0x17e   :  { %4738 = vmatprep.subr.bf16.mxu1 %v5103_v1  ;;  %v974_v1 = vadd.s32 3456, %v5482_v39 }
 0x17f   :  { %vm1063_vm13 = vcmp.eq.f32.partialorder %v5546_v26, %v1031_v14  ;;  %v5152_v26 = vld [vmem:[#allocation7 + $0x630] sm:$0xff]  }
 0x180   :  { %4717 = vmatpush3.bf16.msra.mxu0 %v5104_v5  ;;  %v1001_v5 = vand.u32 255, %v969_v59  ;;  %v1006_v13 = vand.u32 255, %v974_v1  ;;  %vm4492_vm0 = vmpackc.low %vm1063_vm13, %vm1063_vm13  ;;  %v5173_v59 = vld [vmem:[#allocation7 + $0x688] sm:$0xff]  }
 0x181   :  { %4739 = vmatpush3.bf16.msra.mxu1 %v5105_v7  ;;  %4718 = vmatprep.subr.bf16.mxu0 %v5106_v8  ;;  %v1004_v7 = vand.u32 255, %v972_v61  ;;  %v5141_v8 = vld [vmem:[#allocation7 + $0x588] sm:$0xff]  }
 0x182   :  { %4740 = vmatprep.subr.bf16.mxu1 %v5107_v16  ;;  %v5143_v16 = vld [vmem:[#allocation7 + $0x5c0] sm:$0xff]   ;;  %v1038_v25 = vcvt.s32.f32 %v1006_v13  ;;  %v5181_v13 = vld [vmem:[#allocation7 + $0x7b8] sm:$0xff]  }
 0x184   :  { %4719 = vmatpush3.bf16.msra.mxu0 %v5108_v20  ;;  %v1033_v20 = vcvt.s32.f32 %v1001_v5  ;;  %vm1070_vm1 = vcmp.eq.f32.partialorder %v5563_v54, %v1038_v25  ;;  %v5155_v54 = vld [vmem:[#allocation7 + $0x6e8] sm:$0xff]   ;;  %v5177_v5 = vld [vmem:[#allocation7 + $0x680] sm:$0xff]  }
 0x185   :  { %4741 = vmatpush3.bf16.msra.mxu1 %v5109_v19  ;;  %4720 = vmatprep.subr.bf16.mxu0 %v5110_v23  ;;  %v1036_v19 = vcvt.s32.f32 %v1004_v7  ;;  %v5145_v23 = vld [vmem:[#allocation7 + $0x580] sm:$0xff]   ;;  %vm4502_vm4 = vmpackc.low %vm1070_vm1, %vm1070_vm1  ;;  %vm5370_vm1 = vmmov 0  }
 0x186   :  { %4742 = vmatprep.subr.bf16.mxu1 %v5111_v28  ;;  %v5147_v28 = vld [vmem:[#allocation7 + $0x6f8] sm:$0xff]   ;;  %vm1065_vm14 = vcmp.eq.f32.partialorder %v5549_v30, %v1033_v20  ;;  %v5153_v30 = vld [vmem:[#allocation7 + $0x6b0] sm:$0xff]  }
 0x187   :  { %vm1068_vm15 = vcmp.eq.f32.partialorder %v5561_v51, %v1036_v19  ;;  %vm4496_vm2 = vmpackc.low %vm1065_vm14, %vm1065_vm14  ;;  %v5154_v51 = vld [vmem:[#allocation7 + $0x668] sm:$0xff]   ;;  %v5183_v20 = vld [vmem:[#allocation7 + $0x7f0] sm:$0xff]  }
 0x188   :  { %4721 = vmatpush3.bf16.msra.mxu0 %v5112_v34  ;;  %v5149_v34 = vld [vmem:[#allocation7 + $0x6b8] sm:$0xff]   ;;  %vm4498_vm3 = vmpackc.low %vm1068_vm15, %vm1068_vm15 }
 0x189   :  { %4743 = vmatpush3.bf16.msra.mxu1 %v5113_v36  ;;  %4750 = vmatprep.subr.bf16.mxu0 %v5114_v37  ;;  %v5151_v36 = vld [vmem:[#allocation7 + $0x6f0] sm:$0xff]   ;;  %v5156_v37 = vld [vmem:[#allocation7 + $0x628] sm:$0xff]  }
 0x18a   :  { %4772 = vmatprep.subr.bf16.mxu1 %v5115_v41  ;;  %v5158_v41 = vld [vmem:[#allocation7 + $0x660] sm:$0xff]  }
 0x18b   :  { %4485 = vmatmul.mubr.msk.bf16.vlgmr.msra.gmra.mxu0 %vm4484_vm10, %v5368_v3 }
 0x18c   :  { %4489 = vmatmul.mubr.msk.bf16.vlgmr.msra.gmra.mxu1 %vm4488_vm8, %v5368_v3  ;;  %4751 = vmatpush3.bf16.msra.mxu0 %v5116_v42  ;;  %v5159_v42 = vld [vmem:[#allocation7 + $0x6e0] sm:$0xff]  }
 0x18d   :  { %4773 = vmatpush3.bf16.msra.mxu1 %v5117_v43  ;;  %4752 = vmatprep.subr.bf16.mxu0 %v5118_v44  ;;  %v5160_v43 = vld [vmem:[#allocation7 + $0x620] sm:$0xff]  }
 0x18e   :  { %4774 = vmatprep.subr.bf16.mxu1 %v5119_v45  ;;  %4491 = vmatprep.mubr.msk.bf16.mxu0 %vm4490_vm11, %v5368_v3  ;;  %v5161_v44 = vld [vmem:[#allocation7 + $0x6a0] sm:$0xff]   ;;  %v5162_v45 = vld [vmem:[#allocation7 + $0x658] sm:$0xff]  }
 0x18f   :  { %4495 = vmatprep.mubr.msk.bf16.mxu1 %vm4494_vm12, %v5368_v3 }
 0x190   :  { %4753 = vmatpush3.bf16.msra.mxu0 %v5120_v12  ;;  %v5163_v12 = vld [vmem:[#allocation7 + $0x6d8] sm:$0xff]  }
 0x191   :  { %4775 = vmatpush3.bf16.msra.mxu1 %v5121_v15  ;;  %4754 = vmatprep.subr.bf16.mxu0 %v5122_v31  ;;  %v5164_v15 = vld [vmem:[#allocation7 + $0x618] sm:$0xff]  }
 0x192   :  { %4776 = vmatprep.subr.bf16.mxu1 %v5123_v47  ;;  %v5165_v31 = vld [vmem:[#allocation7 + $0x698] sm:$0xff]   ;;  %v5166_v47 = vld [vmem:[#allocation7 + $0x650] sm:$0xff]  }
 0x194   :  { %4755 = vmatpush3.bf16.msra.mxu0 %v5124_v33  ;;  %v5167_v33 = vld [vmem:[#allocation7 + $0x6d0] sm:$0xff]  }
 0x195   :  { %4777 = vmatpush3.bf16.msra.mxu1 %v5125_v27  ;;  %4756 = vmatprep.subr.bf16.mxu0 %v5126_v29  ;;  %v971_v27 = vadd.s32 3072, %v5482_v39  ;;  %v973_v29 = vadd.s32 3328, %v5482_v39 }
 0x196   :  { %4778 = vmatprep.subr.bf16.mxu1 %v5127_v50  ;;  %v5168_v50 = vld [vmem:[#allocation7 + $0x610] sm:$0xff]  }
 0x198   :  { %4757 = vmatpush3.bf16.msra.mxu0 %v5128_v53  ;;  %v976_v53 = vadd.s32 3712, %v5482_v39 }
 0x199   :  { %4779 = vmatpush3.bf16.msra.mxu1 %v5129_v18  ;;  %4758 = vmatprep.subr.bf16.mxu0 %v5130_v48  ;;  %v5169_v18 = vld [vmem:[#allocation7 + $0x690] sm:$0xff]   ;;  %v5170_v48 = vld [vmem:[#allocation7 + $0x648] sm:$0xff]  }
 0x19a   :  { %4780 = vmatprep.subr.bf16.mxu1 %v5131_v11  ;;  %v978_v11 = vadd.s32 3968, %v5482_v39  ;;  %v1008_v57 = vand.u32 255, %v976_v53 }
 0x19c   :  { %4759 = vmatpush3.bf16.msra.mxu0 %v5132_v52  ;;  %v5171_v52 = vld [vmem:[#allocation7 + $0x6c8] sm:$0xff]   ;;  %v1010_v61 = vand.u32 255, %v978_v11  ;;  %v1040_v4 = vcvt.s32.f32 %v1008_v57  ;;  %v5206_v11 = vld [vmem:[#allocation7 + $0x740] sm:$0xff]  }
 0x19d   :  { %4781 = vmatpush3.bf16.msra.mxu1 %v5133_v56  ;;  %4760 = vmatprep.subr.bf16.mxu0 %v5134_v55  ;;  %v1003_v56 = vand.u32 255, %v971_v27  ;;  %v1005_v55 = vand.u32 255, %v973_v29  ;;  %v5202_v27 = vld [vmem:[#allocation7 + $0x748] sm:$0xff]   ;;  %v5209_v57 = vld [vmem:[#allocation7 + $0x780] sm:$0xff]  }
 0x19e   :  { %4782 = vmatprep.subr.bf16.mxu1 %v5135_v58  ;;  %v5172_v58 = vld [vmem:[#allocation7 + $0x608] sm:$0xff]   ;;  %v1042_v7 = vcvt.s32.f32 %v1010_v61  ;;  %vm1072_vm7 = vcmp.eq.f32.partialorder %v5572_v17, %v1040_v4 }
 0x19f   :  { %v1037_v1 = vcvt.s32.f32 %v1005_v55  ;;  %vm4506_vm11 = vmpackc.low %vm1072_vm7, %vm1072_vm7  ;;  %v5203_v29 = vld [vmem:[#allocation7 + $0x7c8] sm:$0xff]  }
 0x1a0   :  { %4761 = vmatpush3.bf16.msra.mxu0 %v5136_v60  ;;  %v5174_v60 = vld [vmem:[#allocation7 + $0x640] sm:$0xff]   ;;  %vm1074_vm9 = vcmp.eq.f32.partialorder %v5574_v21, %v1042_v7  ;;  %v5186_v21 = vld [vmem:[#allocation7 + $0x768] sm:$0xff]  }
 0x1a1   :  { %4783 = vmatpush3.bf16.msra.mxu1 %v5137_v62  ;;  %4762 = vmatprep.subr.bf16.mxu0 %v5138_v63  ;;  %v5175_v62 = vld [vmem:[#allocation7 + $0x6c0] sm:$0xff]   ;;  %v1035_v63 = vcvt.s32.f32 %v1003_v56  ;;  %vm1069_vm6 = vcmp.eq.f32.partialorder %v5559_v49, %v1037_v1  ;;  %v5184_v49 = vld [vmem:[#allocation7 + $0x730] sm:$0xff]   ;;  %vm4510_vm12 = vmpackc.low %vm1074_vm9, %vm1074_vm9 }
 0x1a2   :  { %4784 = vmatprep.subr.bf16.mxu1 %v5139_v2  ;;  %v5176_v2 = vld [vmem:[#allocation7 + $0x600] sm:$0xff]   ;;  %vm4504_vm10 = vmpackc.low %vm1069_vm6, %vm1069_vm6 }
 0x1a3   :  { %vm1067_vm5 = vcmp.eq.f32.partialorder %v5556_v46, %v1035_v63 }
 0x1a4   :  { %4763 = vmatpush3.bf16.msra.mxu0 %v5140_v6  ;;  %v5178_v6 = vld [vmem:[#allocation7 + $0x778] sm:$0xff]   ;;  %vm4500_vm8 = vmpackc.low %vm1067_vm5, %vm1067_vm5 }
 0x1a5   :  { %4785 = vmatpush3.bf16.msra.mxu1 %v5141_v8  ;;  %4764 = vmatprep.subr.bf16.mxu0 %v5142_v9  ;;  %v5179_v8 = vld [vmem:[#allocation7 + $0x7f8] sm:$0xff]  }
 0x1a6   :  { %4786 = vmatprep.subr.bf16.mxu1 %v5143_v16  ;;  %v5180_v9 = vld [vmem:[#allocation7 + $0x738] sm:$0xff]   ;;  %v5182_v16 = vld [vmem:[#allocation7 + $0x770] sm:$0xff]  }
 0x1a8   :  { %4765 = vmatpush3.bf16.msra.mxu0 %v5144_v22  ;;  %v5185_v22 = vld [vmem:[#allocation7 + $0x7b0] sm:$0xff]  }
 0x1a9   :  { %4787 = vmatpush3.bf16.msra.mxu1 %v5145_v23  ;;  %4794 = vmatprep.subr.bf16.mxu0 %v5146_v24  ;;  %v5187_v24 = vld [vmem:[#allocation7 + $0x7e8] sm:$0xff]  }
 0x1aa   :  { %4816 = vmatprep.subr.bf16.mxu1 %v5147_v28 }
 0x1ab   :  { %4493 = vmatmul.mubr.msk.bf16.vlgmr.msra.gmra.mxu0 %vm4492_vm0, %v5368_v3 }
 0x1ac   :  { %4497 = vmatmul.mubr.msk.bf16.vlgmr.msra.gmra.mxu1 %vm4496_vm2, %v5368_v3  ;;  %4795 = vmatpush3.bf16.msra.mxu0 %v5148_v32  ;;  %vm4079_vm2 = vcmp.lt.s32.totalorder %v5482_v39, 6 }
 0x1ad   :  { %4499 = vmatprep.mubr.msk.bf16.mxu0 %vm4498_vm3, %v5368_v3  ;;  %4817 = vmatpush3.bf16.msra.mxu1 %v5149_v34  ;;  %v5188_v34 = vld [vmem:[#allocation7 + $0x728] sm:$0xff]   ;;  %vm4091_vm3 = vcmp.ge.s32.totalorder %v5482_v39, 6 }
 0x1ae   :  { %4503 = vmatprep.mubr.msk.bf16.mxu1 %vm4502_vm4, %v5368_v3  ;;  %4796 = vmatprep.subr.bf16.mxu0 %v5150_v35  ;;  %vm4092_vm4 = vcmp.lt.s32.totalorder %v5482_v39, 12 }
 0x1af   :  { %4818 = vmatprep.subr.bf16.mxu1 %v5151_v36  ;;  %vm4093_vm5 = vmand %vm4091_vm3, %vm4092_vm4 }
 0x1b0   :  { %4797 = vmatpush3.bf16.msra.mxu0 %v5152_v26  ;;  %v5189_v26 = vld [vmem:[#allocation7 + $0x7a8] sm:$0xff]  }
 0x1b1   :  { %4819 = vmatpush3.bf16.msra.mxu1 %v5153_v30  ;;  %4798 = vmatprep.subr.bf16.mxu0 %v5154_v51  ;;  %v5190_v30 = vld [vmem:[#allocation7 + $0x760] sm:$0xff]  }
 0x1b2   :  { %4820 = vmatprep.subr.bf16.mxu1 %v5155_v54  ;;  %v5191_v54 = vld [vmem:[#allocation7 + $0x7e0] sm:$0xff]  }
 0x1b4   :  { %4799 = vmatpush3.bf16.msra.mxu0 %v5156_v37  ;;  %v5192_v37 = vld [vmem:[#allocation7 + $0x720] sm:$0xff]  }
 0x1b5   :  { %4821 = vmatpush3.bf16.msra.mxu1 %v5157_v40  ;;  %4800 = vmatprep.subr.bf16.mxu0 %v5158_v41  ;;  %v5193_v40 = vld [vmem:[#allocation7 + $0x7a0] sm:$0xff]   ;;  %v5194_v41 = vld [vmem:[#allocation7 + $0x758] sm:$0xff]  }
 0x1b6   :  { %4822 = vmatprep.subr.bf16.mxu1 %v5159_v42  ;;  %v5195_v42 = vld [vmem:[#allocation7 + $0x7d8] sm:$0xff]  }
 0x1b8   :  { %4801 = vmatpush3.bf16.msra.mxu0 %v5160_v43  ;;  %v5196_v43 = vld [vmem:[#allocation7 + $0x718] sm:$0xff]  }
 0x1b9   :  { %4823 = vmatpush3.bf16.msra.mxu1 %v5161_v44  ;;  %4802 = vmatprep.subr.bf16.mxu0 %v5162_v45  ;;  %v5197_v44 = vld [vmem:[#allocation7 + $0x798] sm:$0xff]   ;;  %v5198_v45 = vld [vmem:[#allocation7 + $0x750] sm:$0xff]  }
 0x1ba   :  { %4824 = vmatprep.subr.bf16.mxu1 %v5163_v12  ;;  %v5199_v12 = vld [vmem:[#allocation7 + $0x7d0] sm:$0xff]  }
 0x1bc   :  { %4803 = vmatpush3.bf16.msra.mxu0 %v5164_v15  ;;  %v975_v15 = vadd.s32 3584, %v5482_v39 }
 0x1bd   :  { %4825 = vmatpush3.bf16.msra.mxu1 %v5165_v31  ;;  %4804 = vmatprep.subr.bf16.mxu0 %v5166_v47  ;;  %v977_v31 = vadd.s32 3840, %v5482_v39  ;;  %v5200_v47 = vld [vmem:[#allocation7 + $0x710] sm:$0xff]  }
 0x1be   :  { %4826 = vmatprep.subr.bf16.mxu1 %v5167_v33  ;;  %v5201_v33 = vld [vmem:[#allocation7 + $0x790] sm:$0xff]  }
 0x1bf   :  { %v1009_v53 = vand.u32 255, %v977_v31  ;;  %v5220_v31 = vld [vmem:[#allocation10 + $0x28] sm:$0xff]  }
 0x1c0   :  { %4805 = vmatpush3.bf16.msra.mxu0 %v5168_v50  ;;  %v1007_v50 = vand.u32 255, %v975_v15  ;;  %v5219_v15 = vld [vmem:[#allocation10 + $0x30] sm:$0xff]  }
 0x1c1   :  { %4827 = vmatpush3.bf16.msra.mxu1 %v5169_v18  ;;  %4806 = vmatprep.subr.bf16.mxu0 %v5170_v48  ;;  %v5204_v18 = vld [vmem:[#allocation7 + $0x708] sm:$0xff]   ;;  %v1041_v55 = vcvt.s32.f32 %v1009_v53 }
 0x1c2   :  { %4828 = vmatprep.subr.bf16.mxu1 %v5171_v52  ;;  %v5205_v48 = vld [vmem:[#allocation7 + $0x788] sm:$0xff]   ;;  %v5207_v52 = vld [vmem:[#allocation7 + $0x7c0] sm:$0xff]   ;;  %v1039_v56 = vcvt.s32.f32 %v1007_v50 }
 0x1c3   :  { %vm1073_vm14 = vcmp.eq.f32.partialorder %v5570_v0, %v1041_v55 }
 0x1c4   :  { %4807 = vmatpush3.bf16.msra.mxu0 %v5172_v58  ;;  %v5208_v58 = vld [vmem:[#allocation7 + $0x700] sm:$0xff]   ;;  %vm1071_vm13 = vcmp.eq.f32.partialorder %v5568_v10, %v1039_v56  ;;  %vm4512_vm0 = vmpackc.low %vm1073_vm14, %vm1073_vm14 }
 0x1c5   :  { %4829 = vmatpush3.bf16.msra.mxu1 %v5173_v59  ;;  %4808 = vmatprep.subr.bf16.mxu0 %v5174_v60  ;;  %vm4508_vm15 = vmpackc.low %vm1071_vm13, %vm1071_vm13 }
 0x1c6   :  { %4830 = vmatprep.subr.bf16.mxu1 %v5175_v62 }
 0x1c8   :  { %4809 = vmatpush3.bf16.msra.mxu0 %v5176_v2 }
 0x1c9   :  { %4831 = vmatpush3.bf16.msra.mxu1 %v5177_v5  ;;  %4838 = vmatprep.subr.bf16.mxu0 %v5178_v6 }
 0x1ca   :  { %4860 = vmatprep.subr.bf16.mxu1 %v5179_v8 }
 0x1cb   :  { %4501 = vmatmul.mubr.msk.bf16.vlgmr.msra.gmra.mxu0 %vm4500_vm8, %v5368_v3  ;;  %v4546_v14 = vpop.f32.mrf.mxu0 }
 0x1cc   :  { %4505 = vmatmul.mubr.msk.bf16.vlgmr.msra.gmra.mxu1 %vm4504_vm10, %v5368_v3  ;;  %v4568_v46 = vpop.f32.mrf.mxu1  ;;  %4839 = vmatpush3.bf16.msra.mxu0 %v5180_v9 }
 0x1cd   :  { %4507 = vmatprep.mubr.msk.bf16.mxu0 %vm4506_vm11, %v5368_v3  ;;  %4861 = vmatpush3.bf16.msra.mxu1 %v5181_v13  ;;  %v4547_v17 = vpop.f32.mrf.mxu0 }
 0x1ce   :  { %4511 = vmatprep.mubr.msk.bf16.mxu1 %vm4510_vm12, %v5368_v3  ;;  %v4548_v19 = vadd.f32 %v4547_v17, %v4546_v14  ;;  %v4569_v23 = vpop.f32.mrf.mxu1  ;;  %4840 = vmatprep.subr.bf16.mxu0 %v5182_v16 }
 0x1cf   :  { %v4570_v25 = vadd.f32 %v4569_v23, %v4568_v46  ;;  %4862 = vmatprep.subr.bf16.mxu1 %v5183_v20  ;;  %v4549_v28 = vpop.f32.mrf.mxu0  ;;  %v5211_v23 = vld [vmem:[#allocation8 + $0x30] sm:$0xff]  }
 0x1d0   :  { %v4571_v32 = vpop.f32.mrf.mxu1  ;;  %4841 = vmatpush3.bf16.msra.mxu0 %v5184_v49  ;;  %v5214_v28 = vld [vmem:[#allocation8 + $0x18] sm:$0xff]  }
 0x1d1   :  { %v5632_v35 = vadd.f32 %v4570_v25, %v4548_v19  ;;  %4863 = vmatpush3.bf16.msra.mxu1 %v5185_v22  ;;  %v4550_v36 = vpop.f32.mrf.mxu0  ;;  %4842 = vmatprep.subr.bf16.mxu0 %v5186_v21  ;;  %v5210_v21 = vld [vmem:[#allocation8 + $0x38] sm:$0xff]   ;;  %v5369_v19 = vmov 0.0   ;;  %v5213_v25 = vld [vmem:[#allocation8 + $0x20] sm:$0xff]  }
 0x1d2   :  { %v4572_v51 = vpop.f32.mrf.mxu1  ;;  %4864 = vmatprep.subr.bf16.mxu1 %v5187_v24  ;;  %v5212_v24 = vld [vmem:[#allocation8 + $0x28] sm:$0xff]  }
 0x1d4   :  { %4843 = vmatpush3.bf16.msra.mxu0 %v5188_v34  ;;  %v5215_v34 = vld [vmem:[#allocation8 + $0x10] sm:$0xff]  }
 0x1d5   :  { %4865 = vmatpush3.bf16.msra.mxu1 %v5189_v26  ;;  %4844 = vmatprep.subr.bf16.mxu0 %v5190_v30 }
 0x1d6   :  { %4866 = vmatprep.subr.bf16.mxu1 %v5191_v54 }
 0x1d8   :  { %4845 = vmatpush3.bf16.msra.mxu0 %v5192_v37  ;;  %v5216_v37 = vld [vmem:[#allocation8 + $0x8] sm:$0xff]  }
 0x1d9   :  { %4867 = vmatpush3.bf16.msra.mxu1 %v5193_v40  ;;  %4846 = vmatprep.subr.bf16.mxu0 %v5194_v41 }
 0x1da   :  { %4868 = vmatprep.subr.bf16.mxu1 %v5195_v42 }
 0x1dc   :  { %4847 = vmatpush3.bf16.msra.mxu0 %v5196_v43 }
 0x1dd   :  { %4869 = vmatpush3.bf16.msra.mxu1 %v5197_v44  ;;  %4848 = vmatprep.subr.bf16.mxu0 %v5198_v45  ;;  %v5217_v45 = vld [vmem:[#allocation8] sm:$0xff]  }
 0x1de   :  { %4870 = vmatprep.subr.bf16.mxu1 %v5199_v12  ;;  %v5218_v12 = vld [vmem:[#allocation10 + $0x38] sm:$0xff]  }
 0x1e0   :  { %4849 = vmatpush3.bf16.msra.mxu0 %v5200_v47  ;;  %v5221_v47 = vld [vmem:[#allocation10 + $0x20] sm:$0xff]  }
 0x1e1   :  { %4871 = vmatpush3.bf16.msra.mxu1 %v5201_v33  ;;  %4850 = vmatprep.subr.bf16.mxu0 %v5202_v27  ;;  %v5222_v33 = vld [vmem:[#allocation10 + $0x18] sm:$0xff]   ;;  %v5223_v27 = vld [vmem:[#allocation10 + $0x10] sm:$0xff]  }
 0x1e2   :  { %4872 = vmatprep.subr.bf16.mxu1 %v5203_v29 }
 0x1e4   :  { %4851 = vmatpush3.bf16.msra.mxu0 %v5204_v18 }
 0x1e5   :  { %4873 = vmatpush3.bf16.msra.mxu1 %v5205_v48  ;;  %4852 = vmatprep.subr.bf16.mxu0 %v5206_v11 }
 0x1e6   :  { %4874 = vmatprep.subr.bf16.mxu1 %v5207_v52 }
 0x1e8   :  { %4853 = vmatpush3.bf16.msra.mxu0 %v5208_v58 }
 0x1e9   :  { %4875 = vmatpush3.bf16.msra.mxu1 %v5209_v57  ;;  %4900 = vmatprep.subr.bf16.mxu0 %v5369_v19 }
 0x1ea   :  { %4920 = vmatprep.subr.bf16.mxu1 %v5369_v19 }
 0x1eb   :  { %v4590_v59 = vpop.f32.mrf.mxu0  ;;  %4509 = vmatmul.mubr.msk.bf16.vlgmr.msra.gmra.mxu0 %vm4508_vm15, %v5368_v3 }
 0x1ec   :  { %v4612_v60 = vpop.f32.mrf.mxu1  ;;  %4513 = vmatmul.mubr.msk.bf16.vlgmr.msra.gmra.mxu1 %vm4512_vm0, %v5368_v3  ;;  %4901 = vmatpush3.bf16.msra.mxu0 %v5210_v21 }
 0x1ed   :  { %v4591_v61 = vpop.f32.mrf.mxu0  ;;  %4902 = vmatprep.subr.bf16.mxu0 %v5369_v19  ;;  %4916 = vmatprep.mubr.msk.bf16.mxu0 %vm5370_vm1, %v5369_v19 }
 0x1ee   :  { %v4592_v62 = vadd.f32 %v4591_v61, %v4590_v59  ;;  %v4613_v63 = vpop.f32.mrf.mxu1  ;;  %4936 = vmatprep.mubr.msk.bf16.mxu1 %vm5370_vm1, %v5369_v19  ;;  %4921 = vmatpush3.bf16.msra.mxu1 %v5218_v12 }
 0x1ef   :  { %v4614_v1 = vadd.f32 %v4613_v63, %v4612_v60  ;;  %v4593_v2 = vpop.f32.mrf.mxu0  ;;  %4922 = vmatprep.subr.bf16.mxu1 %v5369_v19 }
 0x1f0   :  { %v3334_v4 = vadd.f32 %v4592_v62, %v5632_v35  ;;  %v4615_v10 = vpop.f32.mrf.mxu1  ;;  %4903 = vmatpush3.bf16.msra.mxu0 %v5211_v23 }
 0x1f1   :  { %v4594_v5 = vpop.f32.mrf.mxu0  ;;  %4904 = vmatprep.subr.bf16.mxu0 %v5369_v19 }
 0x1f2   :  { %v3374_v0 = vadd.f32 %v4614_v1, %v3334_v4  ;;  %v4616_v6 = vpop.f32.mrf.mxu1  ;;  %4923 = vmatpush3.bf16.msra.mxu1 %v5219_v15 }
 0x1f3   :  { %4924 = vmatprep.subr.bf16.mxu1 %v5369_v19 }
 0x1f4   :  { %4905 = vmatpush3.bf16.msra.mxu0 %v5212_v24 }
 0x1f5   :  { %4906 = vmatprep.subr.bf16.mxu0 %v5369_v19 }
 0x1f6   :  { %4925 = vmatpush3.bf16.msra.mxu1 %v5220_v31 }
 0x1f7   :  { %4926 = vmatprep.subr.bf16.mxu1 %v5369_v19 }
 0x1f8   :  { %4907 = vmatpush3.bf16.msra.mxu0 %v5213_v25 }
 0x1f9   :  { %4908 = vmatprep.subr.bf16.mxu0 %v5369_v19 }
 0x1fa   :  { %4927 = vmatpush3.bf16.msra.mxu1 %v5221_v47 }
 0x1fb   :  { %4928 = vmatprep.subr.bf16.mxu1 %v5369_v19 }
 0x1fc   :  { %4909 = vmatpush3.bf16.msra.mxu0 %v5214_v28 }
 0x1fd   :  { %4910 = vmatprep.subr.bf16.mxu0 %v5369_v19 }
 0x1fe   :  { %4929 = vmatpush3.bf16.msra.mxu1 %v5222_v33 }
 0x1ff   :  { %4930 = vmatprep.subr.bf16.mxu1 %v5369_v19 }
 0x200   :  { %4911 = vmatpush3.bf16.msra.mxu0 %v5215_v34 }
 0x201   :  { %4912 = vmatprep.subr.bf16.mxu0 %v5369_v19 }
 0x202   :  { %4931 = vmatpush3.bf16.msra.mxu1 %v5223_v27 }
 0x203   :  { %4932 = vmatprep.subr.bf16.mxu1 %v5369_v19 }
 0x204   :  { %4913 = vmatpush3.bf16.msra.mxu0 %v5216_v37 }
 0x205   :  { %4914 = vmatprep.subr.bf16.mxu0 %v5369_v19 }
 0x208   :  { %4915 = vmatpush3.bf16.msra.mxu0 %v5217_v45 }
 0x20b   :  { %v4634_v7 = vpop.f32.mrf.mxu0 }
 0x20c   :  { %v4656_v8 = vpop.f32.mrf.mxu1 }
 0x20d   :  { %v4635_v9 = vpop.f32.mrf.mxu0 }
 0x20e   :  { %v4636_v13 = vadd.f32 %v4635_v9, %v4634_v7  ;;  %v4657_v16 = vpop.f32.mrf.mxu1 }
 0x20f   :  { %v4658_v14 = vadd.f32 %v4657_v16, %v4656_v8  ;;  %v4637_v20 = vpop.f32.mrf.mxu0 }
 0x210   :  { %v3414_v46 = vadd.f32 %v4636_v13, %v3374_v0  ;;  %v4659_v3 = vpop.f32.mrf.mxu1 }
 0x211   :  { %v4638_v49 = vpop.f32.mrf.mxu0 }
 0x212   :  { %v3454_v17 = vadd.f32 %v4658_v14, %v3414_v46  ;;  %v4660_v22 = vpop.f32.mrf.mxu1 }
 0x22b   :  { %v4678_v32 = vpop.f32.mrf.mxu0 }
 0x22c   :  { %v4700_v35 = vpop.f32.mrf.mxu1 }
 0x22d   :  { %v4679_v36 = vpop.f32.mrf.mxu0 }
 0x22e   :  { %v4680_v26 = vadd.f32 %v4679_v36, %v4678_v32  ;;  %v4701_v30 = vpop.f32.mrf.mxu1 }
 0x22f   :  { %v4702_v51 = vadd.f32 %v4701_v30, %v4700_v35  ;;  %v4681_v54 = vpop.f32.mrf.mxu0 }
 0x230   :  { %v3494_v40 = vadd.f32 %v4680_v26, %v3454_v17  ;;  %v4703_v41 = vpop.f32.mrf.mxu1 }
 0x231   :  { %v4682_v42 = vpop.f32.mrf.mxu0  ;;  %v5225_v41 = vld [vmem:[#allocation10] sm:$0xff]  }
 0x232   :  { %v3534_v43 = vadd.f32 %v4702_v51, %v3494_v40  ;;  %v4704_v44 = vpop.f32.mrf.mxu1  ;;  %v5224_v40 = vld [vmem:[#allocation10 + $0x8] sm:$0xff]   ;;  %v3878_v42 = vshrl.u32 %v946_v38, 7 }
 0x233   :  { %4933 = vmatpush3.bf16.msra.mxu1 %v5224_v40  ;;  %v3859_v44 = vld [vmem:[%s5674_s5] sm:$0x3]  ;;  %s5371_s5 = smov [#allocation11]  }
 0x234   :  { %4934 = vmatprep.subr.bf16.mxu1 %v5369_v19  ;;  %s4103_s23 = sshll.u32 %s5371_s5, 4  ;;  %s4104_s23 = int_to_ptr.vmem [resolvable:$true] %s4103_s23 }
 0x235   :  { %s5330_s24 = scalar_lea.vmem %s4104_s23, 128  ;;  %p5335_p12 = scmp.lt.s32.totalorder %s4104_s23, %s4104_s23 }
 0x236   :  { %p5331_p11 = scmp.ne.s32.totalorder %s4104_s23, %s5330_s24  ;;  %p5336_p13 = scmp.lt.s32.totalorder %s5330_s24, %s5330_s24 }
 0x237   :  { %4935 = vmatpush3.bf16.msra.mxu1 %v5225_v41 }
 0x238   :  { %p5337_p0 = por %p5336_p13, %p5335_p12 }
 0x23a   :  { %p5338_p1 = pnand %p5337_p0, %p5331_p11 }
 0x24b   :  { %v4722_v29 = vpop.f32.mrf.mxu0 }
 0x24c   :  { %v4744_v50 = vpop.f32.mrf.mxu1 }
 0x24d   :  { %v4723_v53 = vpop.f32.mrf.mxu0 }
 0x24e   :  { %v4724_v18 = vadd.f32 %v4723_v53, %v4722_v29  ;;  %v4745_v48 = vpop.f32.mrf.mxu1 }
 0x24f   :  { %v4746_v11 = vadd.f32 %v4745_v48, %v4744_v50  ;;  %v4725_v52 = vpop.f32.mrf.mxu0  ;;  %v3989_v50 = vsub.s32 1, %v3878_v42 }
 0x250   :  { %v3574_v56 = vadd.f32 %v4724_v18, %v3534_v43  ;;  %v4747_v55 = vpop.f32.mrf.mxu1  ;;  %v3879_v43 = vsub.s32 0, %v3878_v42 }
 0x251   :  { %v4726_v58 = vpop.f32.mrf.mxu0  ;;  %v3990_v19 = vrot.slane %v3859_v44, %v3989_v50 }
 0x252   :  { %v3614_v57 = vadd.f32 %v4746_v11, %v3574_v56  ;;  %v4748_v59 = vpop.f32.mrf.mxu1  ;;  %v3880_v45 = vrot.slane %v3859_v44, %v3879_v43 }
 0x26b   :  { %v4766_v60 = vpop.f32.mrf.mxu0 }
 0x26c   :  { %v4788_v61 = vpop.f32.mrf.mxu1 }
 0x26d   :  { %v4767_v62 = vpop.f32.mrf.mxu0 }
 0x26e   :  { %v4789_v63 = vpop.f32.mrf.mxu1  ;;  %v4768_v14 = vadd.f32 %v4767_v62, %v4766_v60 }
 0x26f   :  { %v4769_v1 = vpop.f32.mrf.mxu0  ;;  %v4790_v46 = vadd.f32 %v4789_v63, %v4788_v61 }
 0x270   :  { %v4791_v2 = vpop.f32.mrf.mxu1  ;;  %v3654_v20 = vadd.f32 %v4768_v14, %v3614_v57 }
 0x271   :  { %v4770_v4 = vpop.f32.mrf.mxu0 }
 0x272   :  { %v4792_v10 = vpop.f32.mrf.mxu1  ;;  %v3694_v49 = vadd.f32 %v4790_v46, %v3654_v20 }
 0x28b   :  { %v4810_v5 = vpop.f32.mrf.mxu0 }
 0x28c   :  { %v4832_v0 = vpop.f32.mrf.mxu1 }
 0x28d   :  { %v4811_v6 = vpop.f32.mrf.mxu0 }
 0x28e   :  { %v4833_v7 = vpop.f32.mrf.mxu1  ;;  %v4812_v3 = vadd.f32 %v4811_v6, %v4810_v5 }
 0x28f   :  { %v4813_v8 = vpop.f32.mrf.mxu0  ;;  %v4834_v21 = vadd.f32 %v4833_v7, %v4832_v0 }
 0x290   :  { %v4835_v9 = vpop.f32.mrf.mxu1  ;;  %v3734_v17 = vadd.f32 %v4812_v3, %v3694_v49 }
 0x291   :  { %v4814_v13 = vpop.f32.mrf.mxu0 }
 0x292   :  { %v4836_v16 = vpop.f32.mrf.mxu1  ;;  %v3774_v25 = vadd.f32 %v4834_v21, %v3734_v17 }
 0x2ab   :  { %v4854_v22 = vpop.f32.mrf.mxu0 }
 0x2ac   :  { %v4876_v23 = vpop.f32.mrf.mxu1 }
 0x2ad   :  { %v4855_v24 = vpop.f32.mrf.mxu0 }
 0x2ae   :  { %v4856_v28 = vadd.f32 %v4855_v24, %v4854_v22  ;;  %v4877_v32 = vpop.f32.mrf.mxu1 }
 0x2af   :  { %v4857_v34 = vpop.f32.mrf.mxu0  ;;  %v4878_v36 = vadd.f32 %v4877_v32, %v4876_v23 }
 0x2b0   :  { %v3814_v35 = vadd.f32 %v4856_v28, %v3774_v25  ;;  %v4879_v26 = vpop.f32.mrf.mxu1 }
 0x2b1   :  { %v4858_v30 = vpop.f32.mrf.mxu0 }
 0x2b2   :  { %v3854_v51 = vadd.f32 %v4878_v36, %v3814_v35  ;;  %v4880_v54 = vpop.f32.mrf.mxu1 }
 0x2b4   :  { %v3860_v37 = vpack.c.bf16 %v3854_v51, %v3854_v51 }
 0x2b6   :  { %4917 = vmatmul.mubr.bf16.vlgmr.msra.gmra.mxu0 %v3860_v37 }
 0x376   :  { %v3963_v12 = vpop.f32.mrf.mxu0 }
 0x377   :  { %v3964_v15 = vadd.f32 %v3963_v12, %v3880_v45 }
 0x378   :  { %v4918_v31 = vpop.f32.mrf.mxu0 }
 0x379   :  { %v3969_v47 = vmax.f32 %v3964_v15, 0.0 }
 0x37a   :  { %v3966_v33 = vpop.f32.mrf.mxu0 }
 0x37b   :  { %v3970_v27 = vpack.c.bf16 %v3969_v47, %v3969_v47 }
 0x37c   :  { %v4919_v29 = vpop.f32.mrf.mxu0 }
 0x37d   :  { %4937 = vmatmul.mubr.bf16.vlgmr.msra.gmra.mxu1 %v3970_v27 }
 0x43d   :  { %v4073_v53 = vpop.f32.mrf.mxu1 }
 0x43e   :  { %v4074_v38 = vadd.f32 %v4073_v53, %v3990_v19 }
 0x43f   :  { %v4938_v18 = vpop.f32.mrf.mxu1 }
 0x440   :  { %v4080_v48 = vsel %vm4079_vm2, %v4074_v38, -1e+30 }
 0x441   :  { %4081 = vmax.xlane.f32.xlu0 %v4080_v48  ;;  %v4076_v11 = vpop.f32.mrf.mxu1 }
 0x443   :  { %v4939_v52 = vpop.f32.mrf.mxu1 }
 0x4ca   :  { %v4082_v56 = vpop.xlane.xlu0 %4081 }
 0x4cb   :  { %v4083_v55 = vsub.f32 %v4080_v48, %v4082_v56 }
 0x4cd   :  { %v4084_v58 = vmul.f32 1.442695, %v4083_v55 }
 0x4cf   :  { %5226 = vpow2.f32 %v4084_v58 }
 0x4dc   :  { %v5227_v57 = vpop.eup %5226 }
 0x4dd   :  { %4086 = vadd.xlane.f32.xlu0 %v5227_v57 }
 0x566   :  { %v4087_v59 = vpop.xlane.xlu0 %4086 }
 0x567   :  { %5228 = vlog2.f32 %v4087_v59 }
 0x574   :  { %v5229_v60 = vpop.eup %5228 }
 0x575   :  { %v4089_v61 = vmul.f32 0.6931472, %v5229_v60 }
 0x577   :  { %v4090_v62 = vadd.f32 %v4089_v61, %v4082_v56 }
 0x579   :  { %v4094_v63 = vsel %vm4093_vm5, %v4090_v62, 0.0 }
 0x57a   :  { %v4095_v1 = vsub.f32 %v4074_v38, %v4094_v63 }
 0x57c   :  { %4096 = vst [vmem:[#allocation11] sm:$0xff] %v4095_v1 }
 0x57d   :  { %5341 = shalt.err (!%p5338_p1)
}
 0x57e   :  { %4106 = dma.vmem_to_hbm [thread:$0]  %s4104_s23, 128, %s5675_s6, [#allocation4]  }
 0x57f   :  { %5356 = dma.done.wait [#allocation4], 128  }
 0x580   :  { %5357 = vsyncadd [#allocation4], 4294967168 }
 0x581   :  { %4110 = vsyncpa [#allocation3], 1 }
 0x582   :  { %4111 = vsyncpa [#allocation6], 1 }
 0x583   :  { %4112 = vsyncpa [#allocation9], 1 }
 0x584   :  { %4113 = vsyncpa [#allocation4], 1 }

</bundles_post_ra>
